<compile_context>
chip_gen: v7x
topology: tpu7x:2x2x1
jax: 0.10.0
libtpu: 0.0.40
codegen_flags: <defaults>
</compile_context>

<pallas_src>
import jax
import jax.numpy as jnp
from jax.experimental import pallas as pl
from jax.experimental.pallas import tpu as pltpu


# ----------------------------------------------------------------------------
# Fused kernel factory
# ----------------------------------------------------------------------------
def _make_decoder_kernel(T, B, H, num_layers):
    H2, H4 = 2 * H, 4 * H

    def kernel(*refs):
        # ---- unpack refs: inputs, output, scratches --------------------------
        x_ref = refs[0]                              # (T*B, 2*D) bf16, augmented
        pos = 1
        layer_refs = []
        for _ in range(num_layers):
            layer_refs.append(refs[pos:pos + 4])     # wih, bx, whh, bhn
            pos += 4
        w1_ref, b1_ref, w2_ref, b2_ref = refs[pos:pos + 4]
        pos += 4
        o_ref = refs[pos]
        xbufs = refs[pos + 1:pos + 3]                # ping-pong next-layer inputs

        def run_layer(xaug, lrefs, out_ref):
            wih_ref, bx_ref, whh_ref, bhn_ref = lrefs

            # Hoisted input projection: ONE matmul covers all timesteps, both
            # directions, all 3 gates.  Columns: [r_f, r_b, z_f, z_b, n_f, n_b];
            # b_ih + b_hh already folded for r and z.
            g_all = (
                jnp.dot(xaug, wih_ref[...], preferred_element_type=jnp.float32)
                + bx_ref[...]
            )                                        # (T*B, 6H) f32, stays in vregs
            whh = whh_ref[...]                       # (2H, 6H) bf16 block-diagonal
            bhn = bhn_ref[...]                       # (1, 2H)  f32  [b_hn_f | b_hn_b]

            h = jnp.zeros((B, H2), jnp.float32)      # [h_fwd | h_bwd]
            h0 = None
            for t in range(T):                       # static unroll, static offsets
                gx = g_all[t * B:(t + 1) * B, :]     # (B, 6H) value slice
                gh = jnp.dot(h.astype(jnp.bfloat16), whh,
                             preferred_element_type=jnp.float32)   # (B, 6H), ONE matmul
                # One activation per gate covers BOTH directions (B, 2H).
                # PyTorch GRU:
                #   r = sigmoid(W_ir x + b_ir + W_hr h + b_hr)
                #   z = sigmoid(W_iz x + b_iz + W_hz h + b_hz)
                #   n = tanh  (W_in x + b_in + r * (W_hn h + b_hn))
                #   h = (1 - z) * n + z * h_prev
                r = jax.nn.sigmoid(gx[:, :H2] + gh[:, :H2])
                z = jax.nn.sigmoid(gx[:, H2:H4] + gh[:, H2:H4])
                n = jnp.tanh(gx[:, H4:] + r * (gh[:, H4:] + bhn))
                h = (1.0 - z) * n + z * h            # fwd half @ time t, bwd half @ time T-1-t
                if t == 0:
                    h0 = h                           # bwd half == h_bwd(T-1), needed by FC head
                if out_ref is not None:
                    # Next-layer direction-augmented input, row s:
                    #   [f(s), b(T-1-s), f(T-1-s), b(s)]   (matches packed W_ih)
                    out_ref[t * B:(t + 1) * B, 0:H2] = h
                    out_ref[(T - 1 - t) * B:(T - t) * B, H2:H4] = h
            return h0, h

        # ---- stacked bidirectional GRU ---------------------------------------
        xaug = x_ref[...]                            # bf16
        h0 = hT = None
        for l in range(num_layers):
            is_last = (l == num_layers - 1)
            out_ref = None if is_last else xbufs[l % 2]
            h0, hT = run_layer(xaug, layer_refs[l], out_ref)
            if not is_last:
                xaug = out_ref[...].astype(jnp.bfloat16)

        # ---- FC head on rnn_out[:, -1, :] = [h_fwd(T-1) | h_bwd(T-1)] --------
        last = jnp.concatenate([hT[:, :H], h0[:, H:]], axis=-1)   # (B, 2H)
        h1 = jnp.maximum(
            jnp.dot(last.astype(jnp.bfloat16), w1_ref[...],
                    preferred_element_type=jnp.float32) + b1_ref[...],
            0.0,
        )
        # Dropout is identity at inference time.
        o_ref[...] = (
            jnp.dot(h1.astype(jnp.bfloat16), w2_ref[...],
                    preferred_element_type=jnp.float32) + b2_ref[...]
        )

    return kernel


# ----------------------------------------------------------------------------
# Parameter packing (per-gate params -> interleaved / block-diagonal layout)
# ----------------------------------------------------------------------------
def _pack_layer(fwd, bwd, layer_idx, H):
    wih_f, whh_f, bih_f, bhh_f = fwd     # wih: (3, D_dir, H), whh: (3, H, H), biases (3, 1, H)
    wih_b, whh_b, bih_b, bhh_b = bwd
    d_dir = wih_f.shape[1]

    def cf(g):  # fwd-direction columns of gate g   (gate order r=0, z=1, n=2)
        return slice(2 * g * H, (2 * g + 1) * H)

    def cb(g):  # bwd-direction columns of gate g
        return slice((2 * g + 1) * H, (2 * g + 2) * H)

    if layer_idx == 0:
        # Augmented input row layout at timestep t: [x(t) | x(T-1-t)]
        wih = jnp.zeros((2 * d_dir, 6 * H), jnp.float32)
        for g in range(3):
            wih = wih.at[0:d_dir, cf(g)].set(wih_f[g])
            wih = wih.at[d_dir:, cb(g)].set(wih_b[g])
    else:
        # Augmented input row layout at timestep t:
        #   [f(t), b(T-1-t), f(T-1-t), b(t)]   (each H wide)
        assert d_dir == 2 * H
        wih = jnp.zeros((4 * H, 6 * H), jnp.float32)
        for g in range(3):
            wih = wih.at[0 * H:1 * H, cf(g)].set(wih_f[g][0:H])       # f(t)     -> fwd gates
            wih = wih.at[3 * H:4 * H, cf(g)].set(wih_f[g][H:2 * H])   # b(t)     -> fwd gates
            wih = wih.at[2 * H:3 * H, cb(g)].set(wih_b[g][0:H])       # f(T-1-t) -> bwd gates
            wih = wih.at[1 * H:2 * H, cb(g)].set(wih_b[g][H:2 * H])   # b(T-1-t) -> bwd gates

    # Block-diagonal recurrence weight: [h_f | h_b] @ (2H, 6H) -> interleaved gates.
    whh = jnp.zeros((2 * H, 6 * H), jnp.float32)
    for g in range(3):
        whh = whh.at[0:H, cf(g)].set(whh_f[g])
        whh = whh.at[H:, cb(g)].set(whh_b[g])

    # Fold b_ih + b_hh for r and z; b_hn stays separate (r * (W_hn h + b_hn)).
    bx = jnp.concatenate([
        bih_f[0] + bhh_f[0], bih_b[0] + bhh_b[0],
        bih_f[1] + bhh_f[1], bih_b[1] + bhh_b[1],
        bih_f[2], bih_b[2],
    ], axis=-1)                                                      # (1, 6H)
    bhn = jnp.concatenate([bhh_f[2], bhh_b[2]], axis=-1)             # (1, 2H)

    return (wih.astype(jnp.bfloat16), bx, whh.astype(jnp.bfloat16), bhn)


# ----------------------------------------------------------------------------
# Full RNNDecoder forward (single fused pallas_call)
# ----------------------------------------------------------------------------
def rnn_decoder_forward(x_rnn, gru_params, fc_params):
    """x_rnn: (B, T, D) batch_first, like the PyTorch module."""
    B, T, D = x_rnn.shape
    H = gru_params[0]["fwd"][1].shape[-1]
    num_layers = len(gru_params)
    w1, b1, w2, b2 = fc_params
    num_classes = w2.shape[-1]

    # Direction-augmented, time-major layer-0 input:
    #   row t*B + b = [x[b, t, :], x[b, T-1-t, :]]
    x_tm = jnp.transpose(x_rnn, (1, 0, 2))                       # (T, B, D)
    xaug0 = jnp.concatenate([x_tm, x_tm[::-1]], axis=-1)         # (T, B, 2D)
    xaug0 = xaug0.reshape(T * B, 2 * D).astype(jnp.bfloat16)

    flat_params = []
    for idx, layer in enumerate(gru_params):
        flat_params.extend(_pack_layer(layer["fwd"], layer["bwd"], idx, H))
    flat_params.extend([w1.astype(jnp.bfloat16), b1,
                        w2.astype(jnp.bfloat16), b2])

    kernel = _make_decoder_kernel(T, B, H, num_layers)

    return pl.pallas_call(
        kernel,
        out_shape=jax.ShapeDtypeStruct((B, num_classes), jnp.float32),
        scratch_shapes=[
            pltpu.VMEM((T * B, 4 * H), jnp.float32),   # next-layer aug. input (ping)
            pltpu.VMEM((T * B, 4 * H), jnp.float32),   # next-layer aug. input (pong)
        ],
    )(xaug0, *flat_params)


# ----------------------------------------------------------------------------
# Pure-JAX reference (for self-check)
# ----------------------------------------------------------------------------
def _gru_dir_ref(x_tbd, wih, whh, bih, bhh, *, reverse):
    T, B, _ = x_tbd.shape
    H = whh.shape[-1]
    xs = x_tbd[::-1] if reverse else x_tbd

    def step(h, x_t):
        r = jax.nn.sigmoid(x_t @ wih[0] + bih[0] + h @ whh[0] + bhh[0])
        z = jax.nn.sigmoid(x_t @ wih[1] + bih[1] + h @ whh[1] + bhh[1])
        n = jnp.tanh(x_t @ wih[2] + bih[2] + r * (h @ whh[2] + bhh[2]))
        h_new = (1.0 - z) * n + z * h
        return h_new, h_new

    _, outs = jax.lax.scan(step, jnp.zeros((B, H), jnp.float32), xs)
    return outs[::-1] if reverse else outs


def rnn_decoder_ref(x_rnn, gru_params, fc_params):
    x = jnp.transpose(x_rnn, (1, 0, 2))
    for layer in gru_params:
        fwd = _gru_dir_ref(x, *layer["fwd"], reverse=False)
        bwd = _gru_dir_ref(x, *layer["bwd"], reverse=True)
        x = jnp.concatenate([fwd, bwd], axis=-1)
    last = jnp.transpose(x, (1, 0, 2))[:, -1, :]
    w1, b1, w2, b2 = fc_params
    h = jnp.maximum(last @ w1 + b1, 0.0)
    return h @ w2 + b2


# ----------------------------------------------------------------------------
# Deterministic parameter construction (synthetic, not a checkpoint load)
# ----------------------------------------------------------------------------
def make_params(key, *, input_dim, hidden, num_layers, fc_hidden, num_classes):
    scale = 1.0 / jnp.sqrt(hidden)
    gru_params = []
    for layer in range(num_layers):
        d_in = input_dim if layer == 0 else 2 * hidden
        layer_p = {}
        for direction in ("fwd", "bwd"):
            key, k1, k2, k3, k4 = jax.random.split(key, 5)
            wih = jax.random.uniform(k1, (3, d_in, hidden), jnp.float32, -scale, scale)
            whh = jax.random.uniform(k2, (3, hidden, hidden), jnp.float32, -scale, scale)
            bih = jax.random.uniform(k3, (3, 1, hidden), jnp.float32, -scale, scale)
            bhh = jax.random.uniform(k4, (3, 1, hidden), jnp.float32, -scale, scale)
            layer_p[direction] = (wih, whh, bih, bhh)
        gru_params.append(layer_p)

    key, k1, k2, k3, k4 = jax.random.split(key, 5)
    s1 = 1.0 / jnp.sqrt(2 * hidden)
    s2 = 1.0 / jnp.sqrt(fc_hidden)
    w1 = jax.random.uniform(k1, (2 * hidden, fc_hidden), jnp.float32, -s1, s1)
    b1 = jax.random.uniform(k2, (1, fc_hidden), jnp.float32, -s1, s1)
    w2 = jax.random.uniform(k3, (fc_hidden, num_classes), jnp.float32, -s2, s2)
    b2 = jax.random.uniform(k4, (1, num_classes), jnp.float32, -s2, s2)
    return gru_params, (w1, b1, w2, b2)


if __name__ == "__main__":
    B, T = 2, 8
    cnn_out_dim = 32          # rnn input feature size
    rnn_hidden_nodes = 32
    rnn_hidden_layers = 2
    fc_hidden = 256
    num_classes = 2

    key = jax.random.PRNGKey(0)
    key, kx = jax.random.split(key)
    x_rnn = jax.random.normal(kx, (B, T, cnn_out_dim), jnp.float32)

    gru_params, fc_params = make_params(
        key,
        input_dim=cnn_out_dim,
        hidden=rnn_hidden_nodes,
        num_layers=rnn_hidden_layers,
        fc_hidden=fc_hidden,
        num_classes=num_classes,
    )

    out = rnn_decoder_forward(x_rnn, gru_params, fc_params)
    out = jax.block_until_ready(out)

    ref = rnn_decoder_ref(x_rnn, gru_params, fc_params)
    assert out.shape == (B, num_classes)
    # bf16 MXU operands -> slightly looser tolerance than the pure-f32 v1.
    assert jnp.allclose(out, ref, atol=2e-2, rtol=2e-2), (out, ref)

    print("KERNEL_OK")
</pallas_src>

<mosaic_0001>
module attributes {stable_mosaic.version = 11 : i64} {
  func.func @kernel(%arg0: memref<16x64xbf16, #tpu.memory_space<vmem>>, %arg1: memref<64x192xbf16, #tpu.memory_space<vmem>>, %arg2: memref<1x192xf32, #tpu.memory_space<vmem>>, %arg3: memref<64x192xbf16, #tpu.memory_space<vmem>>, %arg4: memref<1x64xf32, #tpu.memory_space<vmem>>, %arg5: memref<128x192xbf16, #tpu.memory_space<vmem>>, %arg6: memref<1x192xf32, #tpu.memory_space<vmem>>, %arg7: memref<64x192xbf16, #tpu.memory_space<vmem>>, %arg8: memref<1x64xf32, #tpu.memory_space<vmem>>, %arg9: memref<64x256xbf16, #tpu.memory_space<vmem>>, %arg10: memref<1x256xf32, #tpu.memory_space<vmem>>, %arg11: memref<256x2xbf16, #tpu.memory_space<vmem>>, %arg12: memref<1x2xf32, #tpu.memory_space<vmem>>, %arg13: memref<2x2xf32, #tpu.memory_space<vmem>>, %arg14: memref<16x128xf32, #tpu.memory_space<vmem>>, %arg15: memref<16x128xf32, #tpu.memory_space<vmem>>) attributes {dimension_semantics = [], scalar_prefetch = 0 : i64, scratch_operands = 2 : i64, tpu.core_type = #tpu.core_type<tc>} {
    %c0 = arith.constant 0 : index
    %c0_0 = arith.constant 0 : index
    %0 = vector.load %arg0[%c0, %c0_0] : memref<16x64xbf16, #tpu.memory_space<vmem>>, vector<16x64xbf16>
    %c0_1 = arith.constant 0 : index
    %c0_2 = arith.constant 0 : index
    %1 = vector.load %arg1[%c0_1, %c0_2] : memref<64x192xbf16, #tpu.memory_space<vmem>>, vector<64x192xbf16>
    %cst = arith.constant dense<0.000000e+00> : vector<16x192xf32>
    %2 = tpu.matmul %0, %1, %cst {dimension_numbers = #tpu.dot_dimension_numbers<[1], [0], [0], [1], [0, 0, 1, 1], [], []>} : vector<16x64xbf16>, vector<64x192xbf16>, vector<16x192xf32> -> vector<16x192xf32>
    %c0_3 = arith.constant 0 : index
    %c0_4 = arith.constant 0 : index
    %3 = vector.load %arg2[%c0_3, %c0_4] : memref<1x192xf32, #tpu.memory_space<vmem>>, vector<1x192xf32>
    %4 = vector.broadcast %3 : vector<1x192xf32> to vector<16x192xf32>
    %5 = arith.addf %2, %4 : vector<16x192xf32>
    %c0_5 = arith.constant 0 : index
    %c0_6 = arith.constant 0 : index
    %6 = vector.load %arg3[%c0_5, %c0_6] : memref<64x192xbf16, #tpu.memory_space<vmem>>, vector<64x192xbf16>
    %c0_7 = arith.constant 0 : index
    %c0_8 = arith.constant 0 : index
    %7 = vector.load %arg4[%c0_7, %c0_8] : memref<1x64xf32, #tpu.memory_space<vmem>>, vector<1x64xf32>
    %cst_9 = arith.constant 0.000000e+00 : f32
    %8 = vector.broadcast %cst_9 : f32 to vector<2x64xf32>
    %9 = vector.extract_strided_slice %5 {offsets = [0, 0], sizes = [2, 192], strides = [1, 1]} : vector<16x192xf32> to vector<2x192xf32>
    %10 = arith.truncf %8 : vector<2x64xf32> to vector<2x64xbf16>
    %cst_10 = arith.constant dense<0.000000e+00> : vector<2x192xf32>
    %11 = tpu.matmul %10, %6, %cst_10 {dimension_numbers = #tpu.dot_dimension_numbers<[1], [0], [0], [1], [0, 0, 1, 1], [], []>} : vector<2x64xbf16>, vector<64x192xbf16>, vector<2x192xf32> -> vector<2x192xf32>
    %12 = vector.extract_strided_slice %9 {offsets = [0, 0], sizes = [2, 64], strides = [1, 1]} : vector<2x192xf32> to vector<2x64xf32>
    %13 = vector.extract_strided_slice %11 {offsets = [0, 0], sizes = [2, 64], strides = [1, 1]} : vector<2x192xf32> to vector<2x64xf32>
    %14 = arith.addf %12, %13 : vector<2x64xf32>
    %15 = arith.negf %14 : vector<2x64xf32>
    %16 = math.exp %15 : vector<2x64xf32>
    %cst_11 = arith.constant 1.000000e+00 : f32
    %17 = vector.broadcast %cst_11 : f32 to vector<2x64xf32>
    %18 = arith.addf %17, %16 : vector<2x64xf32>
    %19 = arith.divf %17, %18 : vector<2x64xf32>
    %20 = vector.extract_strided_slice %9 {offsets = [0, 64], sizes = [2, 64], strides = [1, 1]} : vector<2x192xf32> to vector<2x64xf32>
    %21 = vector.extract_strided_slice %11 {offsets = [0, 64], sizes = [2, 64], strides = [1, 1]} : vector<2x192xf32> to vector<2x64xf32>
    %22 = arith.addf %20, %21 : vector<2x64xf32>
    %23 = arith.negf %22 : vector<2x64xf32>
    %24 = math.exp %23 : vector<2x64xf32>
    %cst_12 = arith.constant 1.000000e+00 : f32
    %25 = vector.broadcast %cst_12 : f32 to vector<2x64xf32>
    %26 = arith.addf %25, %24 : vector<2x64xf32>
    %27 = arith.divf %25, %26 : vector<2x64xf32>
    %28 = vector.extract_strided_slice %9 {offsets = [0, 128], sizes = [2, 64], strides = [1, 1]} : vector<2x192xf32> to vector<2x64xf32>
    %29 = vector.extract_strided_slice %11 {offsets = [0, 128], sizes = [2, 64], strides = [1, 1]} : vector<2x192xf32> to vector<2x64xf32>
    %30 = vector.broadcast %7 : vector<1x64xf32> to vector<2x64xf32>
    %31 = arith.addf %29, %30 : vector<2x64xf32>
    %32 = arith.mulf %19, %31 : vector<2x64xf32>
    %33 = arith.addf %28, %32 : vector<2x64xf32>
    %34 = math.tanh %33 : vector<2x64xf32>
    %cst_13 = arith.constant 1.000000e+00 : f32
    %35 = vector.broadcast %cst_13 : f32 to vector<2x64xf32>
    %36 = arith.subf %35, %27 : vector<2x64xf32>
    %37 = arith.mulf %36, %34 : vector<2x64xf32>
    %38 = arith.mulf %27, %8 : vector<2x64xf32>
    %39 = arith.addf %37, %38 : vector<2x64xf32>
    %c0_14 = arith.constant 0 : index
    %c0_15 = arith.constant 0 : index
    %40 = vector.load %arg14[%c0_14, %c0_15] : memref<16x128xf32, #tpu.memory_space<vmem>>, vector<2x64xf32>
    tpu.vector_store %arg14[%c0_14, %c0_15], %39 {strides = array<i32>} : memref<16x128xf32, #tpu.memory_space<vmem>>, vector<2x64xf32>,
    %c14 = arith.constant 14 : index
    %c64 = arith.constant 64 : index
    %41 = vector.load %arg14[%c14, %c64] : memref<16x128xf32, #tpu.memory_space<vmem>>, vector<2x64xf32>
    tpu.vector_store %arg14[%c14, %c64], %39 {strides = array<i32>} : memref<16x128xf32, #tpu.memory_space<vmem>>, vector<2x64xf32>,
    %42 = vector.extract_strided_slice %5 {offsets = [2, 0], sizes = [2, 192], strides = [1, 1]} : vector<16x192xf32> to vector<2x192xf32>
    %43 = arith.truncf %39 : vector<2x64xf32> to vector<2x64xbf16>
    %cst_16 = arith.constant dense<0.000000e+00> : vector<2x192xf32>
    %44 = tpu.matmul %43, %6, %cst_16 {dimension_numbers = #tpu.dot_dimension_numbers<[1], [0], [0], [1], [0, 0, 1, 1], [], []>} : vector<2x64xbf16>, vector<64x192xbf16>, vector<2x192xf32> -> vector<2x192xf32>
    %45 = vector.extract_strided_slice %42 {offsets = [0, 0], sizes = [2, 64], strides = [1, 1]} : vector<2x192xf32> to vector<2x64xf32>
    %46 = vector.extract_strided_slice %44 {offsets = [0, 0], sizes = [2, 64], strides = [1, 1]} : vector<2x192xf32> to vector<2x64xf32>
    %47 = arith.addf %45, %46 : vector<2x64xf32>
    %48 = arith.negf %47 : vector<2x64xf32>
    %49 = math.exp %48 : vector<2x64xf32>
    %cst_17 = arith.constant 1.000000e+00 : f32
    %50 = vector.broadcast %cst_17 : f32 to vector<2x64xf32>
    %51 = arith.addf %50, %49 : vector<2x64xf32>
    %52 = arith.divf %50, %51 : vector<2x64xf32>
    %53 = vector.extract_strided_slice %42 {offsets = [0, 64], sizes = [2, 64], strides = [1, 1]} : vector<2x192xf32> to vector<2x64xf32>
    %54 = vector.extract_strided_slice %44 {offsets = [0, 64], sizes = [2, 64], strides = [1, 1]} : vector<2x192xf32> to vector<2x64xf32>
    %55 = arith.addf %53, %54 : vector<2x64xf32>
    %56 = arith.negf %55 : vector<2x64xf32>
    %57 = math.exp %56 : vector<2x64xf32>
    %cst_18 = arith.constant 1.000000e+00 : f32
    %58 = vector.broadcast %cst_18 : f32 to vector<2x64xf32>
    %59 = arith.addf %58, %57 : vector<2x64xf32>
    %60 = arith.divf %58, %59 : vector<2x64xf32>
    %61 = vector.extract_strided_slice %42 {offsets = [0, 128], sizes = [2, 64], strides = [1, 1]} : vector<2x192xf32> to vector<2x64xf32>
    %62 = vector.extract_strided_slice %44 {offsets = [0, 128], sizes = [2, 64], strides = [1, 1]} : vector<2x192xf32> to vector<2x64xf32>
    %63 = vector.broadcast %7 : vector<1x64xf32> to vector<2x64xf32>
    %64 = arith.addf %62, %63 : vector<2x64xf32>
    %65 = arith.mulf %52, %64 : vector<2x64xf32>
    %66 = arith.addf %61, %65 : vector<2x64xf32>
    %67 = math.tanh %66 : vector<2x64xf32>
    %cst_19 = arith.constant 1.000000e+00 : f32
    %68 = vector.broadcast %cst_19 : f32 to vector<2x64xf32>
    %69 = arith.subf %68, %60 : vector<2x64xf32>
    %70 = arith.mulf %69, %67 : vector<2x64xf32>
    %71 = arith.mulf %60, %39 : vector<2x64xf32>
    %72 = arith.addf %70, %71 : vector<2x64xf32>
    %c2 = arith.constant 2 : index
    %c0_20 = arith.constant 0 : index
    %73 = vector.load %arg14[%c2, %c0_20] : memref<16x128xf32, #tpu.memory_space<vmem>>, vector<2x64xf32>
    tpu.vector_store %arg14[%c2, %c0_20], %72 {strides = array<i32>} : memref<16x128xf32, #tpu.memory_space<vmem>>, vector<2x64xf32>,
    %c12 = arith.constant 12 : index
    %c64_21 = arith.constant 64 : index
    %74 = vector.load %arg14[%c12, %c64_21] : memref<16x128xf32, #tpu.memory_space<vmem>>, vector<2x64xf32>
    tpu.vector_store %arg14[%c12, %c64_21], %72 {strides = array<i32>} : memref<16x128xf32, #tpu.memory_space<vmem>>, vector<2x64xf32>,
    %75 = vector.extract_strided_slice %5 {offsets = [4, 0], sizes = [2, 192], strides = [1, 1]} : vector<16x192xf32> to vector<2x192xf32>
    %76 = arith.truncf %72 : vector<2x64xf32> to vector<2x64xbf16>
    %cst_22 = arith.constant dense<0.000000e+00> : vector<2x192xf32>
    %77 = tpu.matmul %76, %6, %cst_22 {dimension_numbers = #tpu.dot_dimension_numbers<[1], [0], [0], [1], [0, 0, 1, 1], [], []>} : vector<2x64xbf16>, vector<64x192xbf16>, vector<2x192xf32> -> vector<2x192xf32>
    %78 = vector.extract_strided_slice %75 {offsets = [0, 0], sizes = [2, 64], strides = [1, 1]} : vector<2x192xf32> to vector<2x64xf32>
    %79 = vector.extract_strided_slice %77 {offsets = [0, 0], sizes = [2, 64], strides = [1, 1]} : vector<2x192xf32> to vector<2x64xf32>
    %80 = arith.addf %78, %79 : vector<2x64xf32>
    %81 = arith.negf %80 : vector<2x64xf32>
    %82 = math.exp %81 : vector<2x64xf32>
    %cst_23 = arith.constant 1.000000e+00 : f32
    %83 = vector.broadcast %cst_23 : f32 to vector<2x64xf32>
    %84 = arith.addf %83, %82 : vector<2x64xf32>
    %85 = arith.divf %83, %84 : vector<2x64xf32>
    %86 = vector.extract_strided_slice %75 {offsets = [0, 64], sizes = [2, 64], strides = [1, 1]} : vector<2x192xf32> to vector<2x64xf32>
    %87 = vector.extract_strided_slice %77 {offsets = [0, 64], sizes = [2, 64], strides = [1, 1]} : vector<2x192xf32> to vector<2x64xf32>
    %88 = arith.addf %86, %87 : vector<2x64xf32>
    %89 = arith.negf %88 : vector<2x64xf32>
    %90 = math.exp %89 : vector<2x64xf32>
    %cst_24 = arith.constant 1.000000e+00 : f32
    %91 = vector.broadcast %cst_24 : f32 to vector<2x64xf32>
    %92 = arith.addf %91, %90 : vector<2x64xf32>
    %93 = arith.divf %91, %92 : vector<2x64xf32>
    %94 = vector.extract_strided_slice %75 {offsets = [0, 128], sizes = [2, 64], strides = [1, 1]} : vector<2x192xf32> to vector<2x64xf32>
    %95 = vector.extract_strided_slice %77 {offsets = [0, 128], sizes = [2, 64], strides = [1, 1]} : vector<2x192xf32> to vector<2x64xf32>
    %96 = vector.broadcast %7 : vector<1x64xf32> to vector<2x64xf32>
    %97 = arith.addf %95, %96 : vector<2x64xf32>
    %98 = arith.mulf %85, %97 : vector<2x64xf32>
    %99 = arith.addf %94, %98 : vector<2x64xf32>
    %100 = math.tanh %99 : vector<2x64xf32>
    %cst_25 = arith.constant 1.000000e+00 : f32
    %101 = vector.broadcast %cst_25 : f32 to vector<2x64xf32>
    %102 = arith.subf %101, %93 : vector<2x64xf32>
    %103 = arith.mulf %102, %100 : vector<2x64xf32>
    %104 = arith.mulf %93, %72 : vector<2x64xf32>
    %105 = arith.addf %103, %104 : vector<2x64xf32>
    %c4 = arith.constant 4 : index
    %c0_26 = arith.constant 0 : index
    %106 = vector.load %arg14[%c4, %c0_26] : memref<16x128xf32, #tpu.memory_space<vmem>>, vector<2x64xf32>
    tpu.vector_store %arg14[%c4, %c0_26], %105 {strides = array<i32>} : memref<16x128xf32, #tpu.memory_space<vmem>>, vector<2x64xf32>,
    %c10 = arith.constant 10 : index
    %c64_27 = arith.constant 64 : index
    %107 = vector.load %arg14[%c10, %c64_27] : memref<16x128xf32, #tpu.memory_space<vmem>>, vector<2x64xf32>
    tpu.vector_store %arg14[%c10, %c64_27], %105 {strides = array<i32>} : memref<16x128xf32, #tpu.memory_space<vmem>>, vector<2x64xf32>,
    %108 = vector.extract_strided_slice %5 {offsets = [6, 0], sizes = [2, 192], strides = [1, 1]} : vector<16x192xf32> to vector<2x192xf32>
    %109 = arith.truncf %105 : vector<2x64xf32> to vector<2x64xbf16>
    %cst_28 = arith.constant dense<0.000000e+00> : vector<2x192xf32>
    %110 = tpu.matmul %109, %6, %cst_28 {dimension_numbers = #tpu.dot_dimension_numbers<[1], [0], [0], [1], [0, 0, 1, 1], [], []>} : vector<2x64xbf16>, vector<64x192xbf16>, vector<2x192xf32> -> vector<2x192xf32>
    %111 = vector.extract_strided_slice %108 {offsets = [0, 0], sizes = [2, 64], strides = [1, 1]} : vector<2x192xf32> to vector<2x64xf32>
    %112 = vector.extract_strided_slice %110 {offsets = [0, 0], sizes = [2, 64], strides = [1, 1]} : vector<2x192xf32> to vector<2x64xf32>
    %113 = arith.addf %111, %112 : vector<2x64xf32>
    %114 = arith.negf %113 : vector<2x64xf32>
    %115 = math.exp %114 : vector<2x64xf32>
    %cst_29 = arith.constant 1.000000e+00 : f32
    %116 = vector.broadcast %cst_29 : f32 to vector<2x64xf32>
    %117 = arith.addf %116, %115 : vector<2x64xf32>
    %118 = arith.divf %116, %117 : vector<2x64xf32>
    %119 = vector.extract_strided_slice %108 {offsets = [0, 64], sizes = [2, 64], strides = [1, 1]} : vector<2x192xf32> to vector<2x64xf32>
    %120 = vector.extract_strided_slice %110 {offsets = [0, 64], sizes = [2, 64], strides = [1, 1]} : vector<2x192xf32> to vector<2x64xf32>
    %121 = arith.addf %119, %120 : vector<2x64xf32>
    %122 = arith.negf %121 : vector<2x64xf32>
    %123 = math.exp %122 : vector<2x64xf32>
    %cst_30 = arith.constant 1.000000e+00 : f32
    %124 = vector.broadcast %cst_30 : f32 to vector<2x64xf32>
    %125 = arith.addf %124, %123 : vector<2x64xf32>
    %126 = arith.divf %124, %125 : vector<2x64xf32>
    %127 = vector.extract_strided_slice %108 {offsets = [0, 128], sizes = [2, 64], strides = [1, 1]} : vector<2x192xf32> to vector<2x64xf32>
    %128 = vector.extract_strided_slice %110 {offsets = [0, 128], sizes = [2, 64], strides = [1, 1]} : vector<2x192xf32> to vector<2x64xf32>
    %129 = vector.broadcast %7 : vector<1x64xf32> to vector<2x64xf32>
    %130 = arith.addf %128, %129 : vector<2x64xf32>
    %131 = arith.mulf %118, %130 : vector<2x64xf32>
    %132 = arith.addf %127, %131 : vector<2x64xf32>
    %133 = math.tanh %132 : vector<2x64xf32>
    %cst_31 = arith.constant 1.000000e+00 : f32
    %134 = vector.broadcast %cst_31 : f32 to vector<2x64xf32>
    %135 = arith.subf %134, %126 : vector<2x64xf32>
    %136 = arith.mulf %135, %133 : vector<2x64xf32>
    %137 = arith.mulf %126, %105 : vector<2x64xf32>
    %138 = arith.addf %136, %137 : vector<2x64xf32>
    %c6 = arith.constant 6 : index
    %c0_32 = arith.constant 0 : index
    %139 = vector.load %arg14[%c6, %c0_32] : memref<16x128xf32, #tpu.memory_space<vmem>>, vector<2x64xf32>
    tpu.vector_store %arg14[%c6, %c0_32], %138 {strides = array<i32>} : memref<16x128xf32, #tpu.memory_space<vmem>>, vector<2x64xf32>,
    %c8 = arith.constant 8 : index
    %c64_33 = arith.constant 64 : index
    %140 = vector.load %arg14[%c8, %c64_33] : memref<16x128xf32, #tpu.memory_space<vmem>>, vector<2x64xf32>
    tpu.vector_store %arg14[%c8, %c64_33], %138 {strides = array<i32>} : memref<16x128xf32, #tpu.memory_space<vmem>>, vector<2x64xf32>,
    %141 = vector.extract_strided_slice %5 {offsets = [8, 0], sizes = [2, 192], strides = [1, 1]} : vector<16x192xf32> to vector<2x192xf32>
    %142 = arith.truncf %138 : vector<2x64xf32> to vector<2x64xbf16>
    %cst_34 = arith.constant dense<0.000000e+00> : vector<2x192xf32>
    %143 = tpu.matmul %142, %6, %cst_34 {dimension_numbers = #tpu.dot_dimension_numbers<[1], [0], [0], [1], [0, 0, 1, 1], [], []>} : vector<2x64xbf16>, vector<64x192xbf16>, vector<2x192xf32> -> vector<2x192xf32>
    %144 = vector.extract_strided_slice %141 {offsets = [0, 0], sizes = [2, 64], strides = [1, 1]} : vector<2x192xf32> to vector<2x64xf32>
    %145 = vector.extract_strided_slice %143 {offsets = [0, 0], sizes = [2, 64], strides = [1, 1]} : vector<2x192xf32> to vector<2x64xf32>
    %146 = arith.addf %144, %145 : vector<2x64xf32>
    %147 = arith.negf %146 : vector<2x64xf32>
    %148 = math.exp %147 : vector<2x64xf32>
    %cst_35 = arith.constant 1.000000e+00 : f32
    %149 = vector.broadcast %cst_35 : f32 to vector<2x64xf32>
    %150 = arith.addf %149, %148 : vector<2x64xf32>
    %151 = arith.divf %149, %150 : vector<2x64xf32>
    %152 = vector.extract_strided_slice %141 {offsets = [0, 64], sizes = [2, 64], strides = [1, 1]} : vector<2x192xf32> to vector<2x64xf32>
    %153 = vector.extract_strided_slice %143 {offsets = [0, 64], sizes = [2, 64], strides = [1, 1]} : vector<2x192xf32> to vector<2x64xf32>
    %154 = arith.addf %152, %153 : vector<2x64xf32>
    %155 = arith.negf %154 : vector<2x64xf32>
    %156 = math.exp %155 : vector<2x64xf32>
    %cst_36 = arith.constant 1.000000e+00 : f32
    %157 = vector.broadcast %cst_36 : f32 to vector<2x64xf32>
    %158 = arith.addf %157, %156 : vector<2x64xf32>
    %159 = arith.divf %157, %158 : vector<2x64xf32>
    %160 = vector.extract_strided_slice %141 {offsets = [0, 128], sizes = [2, 64], strides = [1, 1]} : vector<2x192xf32> to vector<2x64xf32>
    %161 = vector.extract_strided_slice %143 {offsets = [0, 128], sizes = [2, 64], strides = [1, 1]} : vector<2x192xf32> to vector<2x64xf32>
    %162 = vector.broadcast %7 : vector<1x64xf32> to vector<2x64xf32>
    %163 = arith.addf %161, %162 : vector<2x64xf32>
    %164 = arith.mulf %151, %163 : vector<2x64xf32>
    %165 = arith.addf %160, %164 : vector<2x64xf32>
    %166 = math.tanh %165 : vector<2x64xf32>
    %cst_37 = arith.constant 1.000000e+00 : f32
    %167 = vector.broadcast %cst_37 : f32 to vector<2x64xf32>
    %168 = arith.subf %167, %159 : vector<2x64xf32>
    %169 = arith.mulf %168, %166 : vector<2x64xf32>
    %170 = arith.mulf %159, %138 : vector<2x64xf32>
    %171 = arith.addf %169, %170 : vector<2x64xf32>
    %c8_38 = arith.constant 8 : index
    %c0_39 = arith.constant 0 : index
    %172 = vector.load %arg14[%c8_38, %c0_39] : memref<16x128xf32, #tpu.memory_space<vmem>>, vector<2x64xf32>
    tpu.vector_store %arg14[%c8_38, %c0_39], %171 {strides = array<i32>} : memref<16x128xf32, #tpu.memory_space<vmem>>, vector<2x64xf32>,
    %c6_40 = arith.constant 6 : index
    %c64_41 = arith.constant 64 : index
    %173 = vector.load %arg14[%c6_40, %c64_41] : memref<16x128xf32, #tpu.memory_space<vmem>>, vector<2x64xf32>
    tpu.vector_store %arg14[%c6_40, %c64_41], %171 {strides = array<i32>} : memref<16x128xf32, #tpu.memory_space<vmem>>, vector<2x64xf32>,
    %174 = vector.extract_strided_slice %5 {offsets = [10, 0], sizes = [2, 192], strides = [1, 1]} : vector<16x192xf32> to vector<2x192xf32>
    %175 = arith.truncf %171 : vector<2x64xf32> to vector<2x64xbf16>
    %cst_42 = arith.constant dense<0.000000e+00> : vector<2x192xf32>
    %176 = tpu.matmul %175, %6, %cst_42 {dimension_numbers = #tpu.dot_dimension_numbers<[1], [0], [0], [1], [0, 0, 1, 1], [], []>} : vector<2x64xbf16>, vector<64x192xbf16>, vector<2x192xf32> -> vector<2x192xf32>
    %177 = vector.extract_strided_slice %174 {offsets = [0, 0], sizes = [2, 64], strides = [1, 1]} : vector<2x192xf32> to vector<2x64xf32>
    %178 = vector.extract_strided_slice %176 {offsets = [0, 0], sizes = [2, 64], strides = [1, 1]} : vector<2x192xf32> to vector<2x64xf32>
    %179 = arith.addf %177, %178 : vector<2x64xf32>
    %180 = arith.negf %179 : vector<2x64xf32>
    %181 = math.exp %180 : vector<2x64xf32>
    %cst_43 = arith.constant 1.000000e+00 : f32
    %182 = vector.broadcast %cst_43 : f32 to vector<2x64xf32>
    %183 = arith.addf %182, %181 : vector<2x64xf32>
    %184 = arith.divf %182, %183 : vector<2x64xf32>
    %185 = vector.extract_strided_slice %174 {offsets = [0, 64], sizes = [2, 64], strides = [1, 1]} : vector<2x192xf32> to vector<2x64xf32>
    %186 = vector.extract_strided_slice %176 {offsets = [0, 64], sizes = [2, 64], strides = [1, 1]} : vector<2x192xf32> to vector<2x64xf32>
    %187 = arith.addf %185, %186 : vector<2x64xf32>
    %188 = arith.negf %187 : vector<2x64xf32>
    %189 = math.exp %188 : vector<2x64xf32>
    %cst_44 = arith.constant 1.000000e+00 : f32
    %190 = vector.broadcast %cst_44 : f32 to vector<2x64xf32>
    %191 = arith.addf %190, %189 : vector<2x64xf32>
    %192 = arith.divf %190, %191 : vector<2x64xf32>
    %193 = vector.extract_strided_slice %174 {offsets = [0, 128], sizes = [2, 64], strides = [1, 1]} : vector<2x192xf32> to vector<2x64xf32>
    %194 = vector.extract_strided_slice %176 {offsets = [0, 128], sizes = [2, 64], strides = [1, 1]} : vector<2x192xf32> to vector<2x64xf32>
    %195 = vector.broadcast %7 : vector<1x64xf32> to vector<2x64xf32>
    %196 = arith.addf %194, %195 : vector<2x64xf32>
    %197 = arith.mulf %184, %196 : vector<2x64xf32>
    %198 = arith.addf %193, %197 : vector<2x64xf32>
    %199 = math.tanh %198 : vector<2x64xf32>
    %cst_45 = arith.constant 1.000000e+00 : f32
    %200 = vector.broadcast %cst_45 : f32 to vector<2x64xf32>
    %201 = arith.subf %200, %192 : vector<2x64xf32>
    %202 = arith.mulf %201, %199 : vector<2x64xf32>
    %203 = arith.mulf %192, %171 : vector<2x64xf32>
    %204 = arith.addf %202, %203 : vector<2x64xf32>
    %c10_46 = arith.constant 10 : index
    %c0_47 = arith.constant 0 : index
    %205 = vector.load %arg14[%c10_46, %c0_47] : memref<16x128xf32, #tpu.memory_space<vmem>>, vector<2x64xf32>
    tpu.vector_store %arg14[%c10_46, %c0_47], %204 {strides = array<i32>} : memref<16x128xf32, #tpu.memory_space<vmem>>, vector<2x64xf32>,
    %c4_48 = arith.constant 4 : index
    %c64_49 = arith.constant 64 : index
    %206 = vector.load %arg14[%c4_48, %c64_49] : memref<16x128xf32, #tpu.memory_space<vmem>>, vector<2x64xf32>
    tpu.vector_store %arg14[%c4_48, %c64_49], %204 {strides = array<i32>} : memref<16x128xf32, #tpu.memory_space<vmem>>, vector<2x64xf32>,
    %207 = vector.extract_strided_slice %5 {offsets = [12, 0], sizes = [2, 192], strides = [1, 1]} : vector<16x192xf32> to vector<2x192xf32>
    %208 = arith.truncf %204 : vector<2x64xf32> to vector<2x64xbf16>
    %cst_50 = arith.constant dense<0.000000e+00> : vector<2x192xf32>
    %209 = tpu.matmul %208, %6, %cst_50 {dimension_numbers = #tpu.dot_dimension_numbers<[1], [0], [0], [1], [0, 0, 1, 1], [], []>} : vector<2x64xbf16>, vector<64x192xbf16>, vector<2x192xf32> -> vector<2x192xf32>
    %210 = vector.extract_strided_slice %207 {offsets = [0, 0], sizes = [2, 64], strides = [1, 1]} : vector<2x192xf32> to vector<2x64xf32>
    %211 = vector.extract_strided_slice %209 {offsets = [0, 0], sizes = [2, 64], strides = [1, 1]} : vector<2x192xf32> to vector<2x64xf32>
    %212 = arith.addf %210, %211 : vector<2x64xf32>
    %213 = arith.negf %212 : vector<2x64xf32>
    %214 = math.exp %213 : vector<2x64xf32>
    %cst_51 = arith.constant 1.000000e+00 : f32
    %215 = vector.broadcast %cst_51 : f32 to vector<2x64xf32>
    %216 = arith.addf %215, %214 : vector<2x64xf32>
    %217 = arith.divf %215, %216 : vector<2x64xf32>
    %218 = vector.extract_strided_slice %207 {offsets = [0, 64], sizes = [2, 64], strides = [1, 1]} : vector<2x192xf32> to vector<2x64xf32>
    %219 = vector.extract_strided_slice %209 {offsets = [0, 64], sizes = [2, 64], strides = [1, 1]} : vector<2x192xf32> to vector<2x64xf32>
    %220 = arith.addf %218, %219 : vector<2x64xf32>
    %221 = arith.negf %220 : vector<2x64xf32>
    %222 = math.exp %221 : vector<2x64xf32>
    %cst_52 = arith.constant 1.000000e+00 : f32
    %223 = vector.broadcast %cst_52 : f32 to vector<2x64xf32>
    %224 = arith.addf %223, %222 : vector<2x64xf32>
    %225 = arith.divf %223, %224 : vector<2x64xf32>
    %226 = vector.extract_strided_slice %207 {offsets = [0, 128], sizes = [2, 64], strides = [1, 1]} : vector<2x192xf32> to vector<2x64xf32>
    %227 = vector.extract_strided_slice %209 {offsets = [0, 128], sizes = [2, 64], strides = [1, 1]} : vector<2x192xf32> to vector<2x64xf32>
    %228 = vector.broadcast %7 : vector<1x64xf32> to vector<2x64xf32>
    %229 = arith.addf %227, %228 : vector<2x64xf32>
    %230 = arith.mulf %217, %229 : vector<2x64xf32>
    %231 = arith.addf %226, %230 : vector<2x64xf32>
    %232 = math.tanh %231 : vector<2x64xf32>
    %cst_53 = arith.constant 1.000000e+00 : f32
    %233 = vector.broadcast %cst_53 : f32 to vector<2x64xf32>
    %234 = arith.subf %233, %225 : vector<2x64xf32>
    %235 = arith.mulf %234, %232 : vector<2x64xf32>
    %236 = arith.mulf %225, %204 : vector<2x64xf32>
    %237 = arith.addf %235, %236 : vector<2x64xf32>
    %c12_54 = arith.constant 12 : index
    %c0_55 = arith.constant 0 : index
    %238 = vector.load %arg14[%c12_54, %c0_55] : memref<16x128xf32, #tpu.memory_space<vmem>>, vector<2x64xf32>
    tpu.vector_store %arg14[%c12_54, %c0_55], %237 {strides = array<i32>} : memref<16x128xf32, #tpu.memory_space<vmem>>, vector<2x64xf32>,
    %c2_56 = arith.constant 2 : index
    %c64_57 = arith.constant 64 : index
    %239 = vector.load %arg14[%c2_56, %c64_57] : memref<16x128xf32, #tpu.memory_space<vmem>>, vector<2x64xf32>
    tpu.vector_store %arg14[%c2_56, %c64_57], %237 {strides = array<i32>} : memref<16x128xf32, #tpu.memory_space<vmem>>, vector<2x64xf32>,
    %240 = vector.extract_strided_slice %5 {offsets = [14, 0], sizes = [2, 192], strides = [1, 1]} : vector<16x192xf32> to vector<2x192xf32>
    %241 = arith.truncf %237 : vector<2x64xf32> to vector<2x64xbf16>
    %cst_58 = arith.constant dense<0.000000e+00> : vector<2x192xf32>
    %242 = tpu.matmul %241, %6, %cst_58 {dimension_numbers = #tpu.dot_dimension_numbers<[1], [0], [0], [1], [0, 0, 1, 1], [], []>} : vector<2x64xbf16>, vector<64x192xbf16>, vector<2x192xf32> -> vector<2x192xf32>
    %243 = vector.extract_strided_slice %240 {offsets = [0, 0], sizes = [2, 64], strides = [1, 1]} : vector<2x192xf32> to vector<2x64xf32>
    %244 = vector.extract_strided_slice %242 {offsets = [0, 0], sizes = [2, 64], strides = [1, 1]} : vector<2x192xf32> to vector<2x64xf32>
    %245 = arith.addf %243, %244 : vector<2x64xf32>
    %246 = arith.negf %245 : vector<2x64xf32>
    %247 = math.exp %246 : vector<2x64xf32>
    %cst_59 = arith.constant 1.000000e+00 : f32
    %248 = vector.broadcast %cst_59 : f32 to vector<2x64xf32>
    %249 = arith.addf %248, %247 : vector<2x64xf32>
    %250 = arith.divf %248, %249 : vector<2x64xf32>
    %251 = vector.extract_strided_slice %240 {offsets = [0, 64], sizes = [2, 64], strides = [1, 1]} : vector<2x192xf32> to vector<2x64xf32>
    %252 = vector.extract_strided_slice %242 {offsets = [0, 64], sizes = [2, 64], strides = [1, 1]} : vector<2x192xf32> to vector<2x64xf32>
    %253 = arith.addf %251, %252 : vector<2x64xf32>
    %254 = arith.negf %253 : vector<2x64xf32>
    %255 = math.exp %254 : vector<2x64xf32>
    %cst_60 = arith.constant 1.000000e+00 : f32
    %256 = vector.broadcast %cst_60 : f32 to vector<2x64xf32>
    %257 = arith.addf %256, %255 : vector<2x64xf32>
    %258 = arith.divf %256, %257 : vector<2x64xf32>
    %259 = vector.extract_strided_slice %240 {offsets = [0, 128], sizes = [2, 64], strides = [1, 1]} : vector<2x192xf32> to vector<2x64xf32>
    %260 = vector.extract_strided_slice %242 {offsets = [0, 128], sizes = [2, 64], strides = [1, 1]} : vector<2x192xf32> to vector<2x64xf32>
    %261 = vector.broadcast %7 : vector<1x64xf32> to vector<2x64xf32>
    %262 = arith.addf %260, %261 : vector<2x64xf32>
    %263 = arith.mulf %250, %262 : vector<2x64xf32>
    %264 = arith.addf %259, %263 : vector<2x64xf32>
    %265 = math.tanh %264 : vector<2x64xf32>
    %cst_61 = arith.constant 1.000000e+00 : f32
    %266 = vector.broadcast %cst_61 : f32 to vector<2x64xf32>
    %267 = arith.subf %266, %258 : vector<2x64xf32>
    %268 = arith.mulf %267, %265 : vector<2x64xf32>
    %269 = arith.mulf %258, %237 : vector<2x64xf32>
    %270 = arith.addf %268, %269 : vector<2x64xf32>
    %c14_62 = arith.constant 14 : index
    %c0_63 = arith.constant 0 : index
    %271 = vector.load %arg14[%c14_62, %c0_63] : memref<16x128xf32, #tpu.memory_space<vmem>>, vector<2x64xf32>
    tpu.vector_store %arg14[%c14_62, %c0_63], %270 {strides = array<i32>} : memref<16x128xf32, #tpu.memory_space<vmem>>, vector<2x64xf32>,
    %c0_64 = arith.constant 0 : index
    %c64_65 = arith.constant 64 : index
    %272 = vector.load %arg14[%c0_64, %c64_65] : memref<16x128xf32, #tpu.memory_space<vmem>>, vector<2x64xf32>
    tpu.vector_store %arg14[%c0_64, %c64_65], %270 {strides = array<i32>} : memref<16x128xf32, #tpu.memory_space<vmem>>, vector<2x64xf32>,
    %c0_66 = arith.constant 0 : index
    %c0_67 = arith.constant 0 : index
    %273 = vector.load %arg14[%c0_66, %c0_67] : memref<16x128xf32, #tpu.memory_space<vmem>>, vector<16x128xf32>
    %274 = arith.truncf %273 : vector<16x128xf32> to vector<16x128xbf16>
    %c0_68 = arith.constant 0 : index
    %c0_69 = arith.constant 0 : index
    %275 = vector.load %arg5[%c0_68, %c0_69] : memref<128x192xbf16, #tpu.memory_space<vmem>>, vector<128x192xbf16>
    %cst_70 = arith.constant dense<0.000000e+00> : vector<16x192xf32>
    %276 = tpu.matmul %274, %275, %cst_70 {dimension_numbers = #tpu.dot_dimension_numbers<[1], [0], [0], [1], [0, 0, 1, 1], [], []>} : vector<16x128xbf16>, vector<128x192xbf16>, vector<16x192xf32> -> vector<16x192xf32>
    %c0_71 = arith.constant 0 : index
    %c0_72 = arith.constant 0 : index
    %277 = vector.load %arg6[%c0_71, %c0_72] : memref<1x192xf32, #tpu.memory_space<vmem>>, vector<1x192xf32>
    %278 = vector.broadcast %277 : vector<1x192xf32> to vector<16x192xf32>
    %279 = arith.addf %276, %278 : vector<16x192xf32>
    %c0_73 = arith.constant 0 : index
    %c0_74 = arith.constant 0 : index
    %280 = vector.load %arg7[%c0_73, %c0_74] : memref<64x192xbf16, #tpu.memory_space<vmem>>, vector<64x192xbf16>
    %c0_75 = arith.constant 0 : index
    %c0_76 = arith.constant 0 : index
    %281 = vector.load %arg8[%c0_75, %c0_76] : memref<1x64xf32, #tpu.memory_space<vmem>>, vector<1x64xf32>
    %cst_77 = arith.constant 0.000000e+00 : f32
    %282 = vector.broadcast %cst_77 : f32 to vector<2x64xf32>
    %283 = vector.extract_strided_slice %279 {offsets = [0, 0], sizes = [2, 192], strides = [1, 1]} : vector<16x192xf32> to vector<2x192xf32>
    %284 = arith.truncf %282 : vector<2x64xf32> to vector<2x64xbf16>
    %cst_78 = arith.constant dense<0.000000e+00> : vector<2x192xf32>
    %285 = tpu.matmul %284, %280, %cst_78 {dimension_numbers = #tpu.dot_dimension_numbers<[1], [0], [0], [1], [0, 0, 1, 1], [], []>} : vector<2x64xbf16>, vector<64x192xbf16>, vector<2x192xf32> -> vector<2x192xf32>
    %286 = vector.extract_strided_slice %283 {offsets = [0, 0], sizes = [2, 64], strides = [1, 1]} : vector<2x192xf32> to vector<2x64xf32>
    %287 = vector.extract_strided_slice %285 {offsets = [0, 0], sizes = [2, 64], strides = [1, 1]} : vector<2x192xf32> to vector<2x64xf32>
    %288 = arith.addf %286, %287 : vector<2x64xf32>
    %289 = arith.negf %288 : vector<2x64xf32>
    %290 = math.exp %289 : vector<2x64xf32>
    %cst_79 = arith.constant 1.000000e+00 : f32
    %291 = vector.broadcast %cst_79 : f32 to vector<2x64xf32>
    %292 = arith.addf %291, %290 : vector<2x64xf32>
    %293 = arith.divf %291, %292 : vector<2x64xf32>
    %294 = vector.extract_strided_slice %283 {offsets = [0, 64], sizes = [2, 64], strides = [1, 1]} : vector<2x192xf32> to vector<2x64xf32>
    %295 = vector.extract_strided_slice %285 {offsets = [0, 64], sizes = [2, 64], strides = [1, 1]} : vector<2x192xf32> to vector<2x64xf32>
    %296 = arith.addf %294, %295 : vector<2x64xf32>
    %297 = arith.negf %296 : vector<2x64xf32>
    %298 = math.exp %297 : vector<2x64xf32>
    %cst_80 = arith.constant 1.000000e+00 : f32
    %299 = vector.broadcast %cst_80 : f32 to vector<2x64xf32>
    %300 = arith.addf %299, %298 : vector<2x64xf32>
    %301 = arith.divf %299, %300 : vector<2x64xf32>
    %302 = vector.extract_strided_slice %283 {offsets = [0, 128], sizes = [2, 64], strides = [1, 1]} : vector<2x192xf32> to vector<2x64xf32>
    %303 = vector.extract_strided_slice %285 {offsets = [0, 128], sizes = [2, 64], strides = [1, 1]} : vector<2x192xf32> to vector<2x64xf32>
    %304 = vector.broadcast %281 : vector<1x64xf32> to vector<2x64xf32>
    %305 = arith.addf %303, %304 : vector<2x64xf32>
    %306 = arith.mulf %293, %305 : vector<2x64xf32>
    %307 = arith.addf %302, %306 : vector<2x64xf32>
    %308 = math.tanh %307 : vector<2x64xf32>
    %cst_81 = arith.constant 1.000000e+00 : f32
    %309 = vector.broadcast %cst_81 : f32 to vector<2x64xf32>
    %310 = arith.subf %309, %301 : vector<2x64xf32>
    %311 = arith.mulf %310, %308 : vector<2x64xf32>
    %312 = arith.mulf %301, %282 : vector<2x64xf32>
    %313 = arith.addf %311, %312 : vector<2x64xf32>
    %314 = vector.extract_strided_slice %279 {offsets = [2, 0], sizes = [2, 192], strides = [1, 1]} : vector<16x192xf32> to vector<2x192xf32>
    %315 = arith.truncf %313 : vector<2x64xf32> to vector<2x64xbf16>
    %cst_82 = arith.constant dense<0.000000e+00> : vector<2x192xf32>
    %316 = tpu.matmul %315, %280, %cst_82 {dimension_numbers = #tpu.dot_dimension_numbers<[1], [0], [0], [1], [0, 0, 1, 1], [], []>} : vector<2x64xbf16>, vector<64x192xbf16>, vector<2x192xf32> -> vector<2x192xf32>
    %317 = vector.extract_strided_slice %314 {offsets = [0, 0], sizes = [2, 64], strides = [1, 1]} : vector<2x192xf32> to vector<2x64xf32>
    %318 = vector.extract_strided_slice %316 {offsets = [0, 0], sizes = [2, 64], strides = [1, 1]} : vector<2x192xf32> to vector<2x64xf32>
    %319 = arith.addf %317, %318 : vector<2x64xf32>
    %320 = arith.negf %319 : vector<2x64xf32>
    %321 = math.exp %320 : vector<2x64xf32>
    %cst_83 = arith.constant 1.000000e+00 : f32
    %322 = vector.broadcast %cst_83 : f32 to vector<2x64xf32>
    %323 = arith.addf %322, %321 : vector<2x64xf32>
    %324 = arith.divf %322, %323 : vector<2x64xf32>
    %325 = vector.extract_strided_slice %314 {offsets = [0, 64], sizes = [2, 64], strides = [1, 1]} : vector<2x192xf32> to vector<2x64xf32>
    %326 = vector.extract_strided_slice %316 {offsets = [0, 64], sizes = [2, 64], strides = [1, 1]} : vector<2x192xf32> to vector<2x64xf32>
    %327 = arith.addf %325, %326 : vector<2x64xf32>
    %328 = arith.negf %327 : vector<2x64xf32>
    %329 = math.exp %328 : vector<2x64xf32>
    %cst_84 = arith.constant 1.000000e+00 : f32
    %330 = vector.broadcast %cst_84 : f32 to vector<2x64xf32>
    %331 = arith.addf %330, %329 : vector<2x64xf32>
    %332 = arith.divf %330, %331 : vector<2x64xf32>
    %333 = vector.extract_strided_slice %314 {offsets = [0, 128], sizes = [2, 64], strides = [1, 1]} : vector<2x192xf32> to vector<2x64xf32>
    %334 = vector.extract_strided_slice %316 {offsets = [0, 128], sizes = [2, 64], strides = [1, 1]} : vector<2x192xf32> to vector<2x64xf32>
    %335 = vector.broadcast %281 : vector<1x64xf32> to vector<2x64xf32>
    %336 = arith.addf %334, %335 : vector<2x64xf32>
    %337 = arith.mulf %324, %336 : vector<2x64xf32>
    %338 = arith.addf %333, %337 : vector<2x64xf32>
    %339 = math.tanh %338 : vector<2x64xf32>
    %cst_85 = arith.constant 1.000000e+00 : f32
    %340 = vector.broadcast %cst_85 : f32 to vector<2x64xf32>
    %341 = arith.subf %340, %332 : vector<2x64xf32>
    %342 = arith.mulf %341, %339 : vector<2x64xf32>
    %343 = arith.mulf %332, %313 : vector<2x64xf32>
    %344 = arith.addf %342, %343 : vector<2x64xf32>
    %345 = vector.extract_strided_slice %279 {offsets = [4, 0], sizes = [2, 192], strides = [1, 1]} : vector<16x192xf32> to vector<2x192xf32>
    %346 = arith.truncf %344 : vector<2x64xf32> to vector<2x64xbf16>
    %cst_86 = arith.constant dense<0.000000e+00> : vector<2x192xf32>
    %347 = tpu.matmul %346, %280, %cst_86 {dimension_numbers = #tpu.dot_dimension_numbers<[1], [0], [0], [1], [0, 0, 1, 1], [], []>} : vector<2x64xbf16>, vector<64x192xbf16>, vector<2x192xf32> -> vector<2x192xf32>
    %348 = vector.extract_strided_slice %345 {offsets = [0, 0], sizes = [2, 64], strides = [1, 1]} : vector<2x192xf32> to vector<2x64xf32>
    %349 = vector.extract_strided_slice %347 {offsets = [0, 0], sizes = [2, 64], strides = [1, 1]} : vector<2x192xf32> to vector<2x64xf32>
    %350 = arith.addf %348, %349 : vector<2x64xf32>
    %351 = arith.negf %350 : vector<2x64xf32>
    %352 = math.exp %351 : vector<2x64xf32>
    %cst_87 = arith.constant 1.000000e+00 : f32
    %353 = vector.broadcast %cst_87 : f32 to vector<2x64xf32>
    %354 = arith.addf %353, %352 : vector<2x64xf32>
    %355 = arith.divf %353, %354 : vector<2x64xf32>
    %356 = vector.extract_strided_slice %345 {offsets = [0, 64], sizes = [2, 64], strides = [1, 1]} : vector<2x192xf32> to vector<2x64xf32>
    %357 = vector.extract_strided_slice %347 {offsets = [0, 64], sizes = [2, 64], strides = [1, 1]} : vector<2x192xf32> to vector<2x64xf32>
    %358 = arith.addf %356, %357 : vector<2x64xf32>
    %359 = arith.negf %358 : vector<2x64xf32>
    %360 = math.exp %359 : vector<2x64xf32>
    %cst_88 = arith.constant 1.000000e+00 : f32
    %361 = vector.broadcast %cst_88 : f32 to vector<2x64xf32>
    %362 = arith.addf %361, %360 : vector<2x64xf32>
    %363 = arith.divf %361, %362 : vector<2x64xf32>
    %364 = vector.extract_strided_slice %345 {offsets = [0, 128], sizes = [2, 64], strides = [1, 1]} : vector<2x192xf32> to vector<2x64xf32>
    %365 = vector.extract_strided_slice %347 {offsets = [0, 128], sizes = [2, 64], strides = [1, 1]} : vector<2x192xf32> to vector<2x64xf32>
    %366 = vector.broadcast %281 : vector<1x64xf32> to vector<2x64xf32>
    %367 = arith.addf %365, %366 : vector<2x64xf32>
    %368 = arith.mulf %355, %367 : vector<2x64xf32>
    %369 = arith.addf %364, %368 : vector<2x64xf32>
    %370 = math.tanh %369 : vector<2x64xf32>
    %cst_89 = arith.constant 1.000000e+00 : f32
    %371 = vector.broadcast %cst_89 : f32 to vector<2x64xf32>
    %372 = arith.subf %371, %363 : vector<2x64xf32>
    %373 = arith.mulf %372, %370 : vector<2x64xf32>
    %374 = arith.mulf %363, %344 : vector<2x64xf32>
    %375 = arith.addf %373, %374 : vector<2x64xf32>
    %376 = vector.extract_strided_slice %279 {offsets = [6, 0], sizes = [2, 192], strides = [1, 1]} : vector<16x192xf32> to vector<2x192xf32>
    %377 = arith.truncf %375 : vector<2x64xf32> to vector<2x64xbf16>
    %cst_90 = arith.constant dense<0.000000e+00> : vector<2x192xf32>
    %378 = tpu.matmul %377, %280, %cst_90 {dimension_numbers = #tpu.dot_dimension_numbers<[1], [0], [0], [1], [0, 0, 1, 1], [], []>} : vector<2x64xbf16>, vector<64x192xbf16>, vector<2x192xf32> -> vector<2x192xf32>
    %379 = vector.extract_strided_slice %376 {offsets = [0, 0], sizes = [2, 64], strides = [1, 1]} : vector<2x192xf32> to vector<2x64xf32>
    %380 = vector.extract_strided_slice %378 {offsets = [0, 0], sizes = [2, 64], strides = [1, 1]} : vector<2x192xf32> to vector<2x64xf32>
    %381 = arith.addf %379, %380 : vector<2x64xf32>
    %382 = arith.negf %381 : vector<2x64xf32>
    %383 = math.exp %382 : vector<2x64xf32>
    %cst_91 = arith.constant 1.000000e+00 : f32
    %384 = vector.broadcast %cst_91 : f32 to vector<2x64xf32>
    %385 = arith.addf %384, %383 : vector<2x64xf32>
    %386 = arith.divf %384, %385 : vector<2x64xf32>
    %387 = vector.extract_strided_slice %376 {offsets = [0, 64], sizes = [2, 64], strides = [1, 1]} : vector<2x192xf32> to vector<2x64xf32>
    %388 = vector.extract_strided_slice %378 {offsets = [0, 64], sizes = [2, 64], strides = [1, 1]} : vector<2x192xf32> to vector<2x64xf32>
    %389 = arith.addf %387, %388 : vector<2x64xf32>
    %390 = arith.negf %389 : vector<2x64xf32>
    %391 = math.exp %390 : vector<2x64xf32>
    %cst_92 = arith.constant 1.000000e+00 : f32
    %392 = vector.broadcast %cst_92 : f32 to vector<2x64xf32>
    %393 = arith.addf %392, %391 : vector<2x64xf32>
    %394 = arith.divf %392, %393 : vector<2x64xf32>
    %395 = vector.extract_strided_slice %376 {offsets = [0, 128], sizes = [2, 64], strides = [1, 1]} : vector<2x192xf32> to vector<2x64xf32>
    %396 = vector.extract_strided_slice %378 {offsets = [0, 128], sizes = [2, 64], strides = [1, 1]} : vector<2x192xf32> to vector<2x64xf32>
    %397 = vector.broadcast %281 : vector<1x64xf32> to vector<2x64xf32>
    %398 = arith.addf %396, %397 : vector<2x64xf32>
    %399 = arith.mulf %386, %398 : vector<2x64xf32>
    %400 = arith.addf %395, %399 : vector<2x64xf32>
    %401 = math.tanh %400 : vector<2x64xf32>
    %cst_93 = arith.constant 1.000000e+00 : f32
    %402 = vector.broadcast %cst_93 : f32 to vector<2x64xf32>
    %403 = arith.subf %402, %394 : vector<2x64xf32>
    %404 = arith.mulf %403, %401 : vector<2x64xf32>
    %405 = arith.mulf %394, %375 : vector<2x64xf32>
    %406 = arith.addf %404, %405 : vector<2x64xf32>
    %407 = vector.extract_strided_slice %279 {offsets = [8, 0], sizes = [2, 192], strides = [1, 1]} : vector<16x192xf32> to vector<2x192xf32>
    %408 = arith.truncf %406 : vector<2x64xf32> to vector<2x64xbf16>
    %cst_94 = arith.constant dense<0.000000e+00> : vector<2x192xf32>
    %409 = tpu.matmul %408, %280, %cst_94 {dimension_numbers = #tpu.dot_dimension_numbers<[1], [0], [0], [1], [0, 0, 1, 1], [], []>} : vector<2x64xbf16>, vector<64x192xbf16>, vector<2x192xf32> -> vector<2x192xf32>
    %410 = vector.extract_strided_slice %407 {offsets = [0, 0], sizes = [2, 64], strides = [1, 1]} : vector<2x192xf32> to vector<2x64xf32>
    %411 = vector.extract_strided_slice %409 {offsets = [0, 0], sizes = [2, 64], strides = [1, 1]} : vector<2x192xf32> to vector<2x64xf32>
    %412 = arith.addf %410, %411 : vector<2x64xf32>
    %413 = arith.negf %412 : vector<2x64xf32>
    %414 = math.exp %413 : vector<2x64xf32>
    %cst_95 = arith.constant 1.000000e+00 : f32
    %415 = vector.broadcast %cst_95 : f32 to vector<2x64xf32>
    %416 = arith.addf %415, %414 : vector<2x64xf32>
    %417 = arith.divf %415, %416 : vector<2x64xf32>
    %418 = vector.extract_strided_slice %407 {offsets = [0, 64], sizes = [2, 64], strides = [1, 1]} : vector<2x192xf32> to vector<2x64xf32>
    %419 = vector.extract_strided_slice %409 {offsets = [0, 64], sizes = [2, 64], strides = [1, 1]} : vector<2x192xf32> to vector<2x64xf32>
    %420 = arith.addf %418, %419 : vector<2x64xf32>
    %421 = arith.negf %420 : vector<2x64xf32>
    %422 = math.exp %421 : vector<2x64xf32>
    %cst_96 = arith.constant 1.000000e+00 : f32
    %423 = vector.broadcast %cst_96 : f32 to vector<2x64xf32>
    %424 = arith.addf %423, %422 : vector<2x64xf32>
    %425 = arith.divf %423, %424 : vector<2x64xf32>
    %426 = vector.extract_strided_slice %407 {offsets = [0, 128], sizes = [2, 64], strides = [1, 1]} : vector<2x192xf32> to vector<2x64xf32>
    %427 = vector.extract_strided_slice %409 {offsets = [0, 128], sizes = [2, 64], strides = [1, 1]} : vector<2x192xf32> to vector<2x64xf32>
    %428 = vector.broadcast %281 : vector<1x64xf32> to vector<2x64xf32>
    %429 = arith.addf %427, %428 : vector<2x64xf32>
    %430 = arith.mulf %417, %429 : vector<2x64xf32>
    %431 = arith.addf %426, %430 : vector<2x64xf32>
    %432 = math.tanh %431 : vector<2x64xf32>
    %cst_97 = arith.constant 1.000000e+00 : f32
    %433 = vector.broadcast %cst_97 : f32 to vector<2x64xf32>
    %434 = arith.subf %433, %425 : vector<2x64xf32>
    %435 = arith.mulf %434, %432 : vector<2x64xf32>
    %436 = arith.mulf %425, %406 : vector<2x64xf32>
    %437 = arith.addf %435, %436 : vector<2x64xf32>
    %438 = vector.extract_strided_slice %279 {offsets = [10, 0], sizes = [2, 192], strides = [1, 1]} : vector<16x192xf32> to vector<2x192xf32>
    %439 = arith.truncf %437 : vector<2x64xf32> to vector<2x64xbf16>
    %cst_98 = arith.constant dense<0.000000e+00> : vector<2x192xf32>
    %440 = tpu.matmul %439, %280, %cst_98 {dimension_numbers = #tpu.dot_dimension_numbers<[1], [0], [0], [1], [0, 0, 1, 1], [], []>} : vector<2x64xbf16>, vector<64x192xbf16>, vector<2x192xf32> -> vector<2x192xf32>
    %441 = vector.extract_strided_slice %438 {offsets = [0, 0], sizes = [2, 64], strides = [1, 1]} : vector<2x192xf32> to vector<2x64xf32>
    %442 = vector.extract_strided_slice %440 {offsets = [0, 0], sizes = [2, 64], strides = [1, 1]} : vector<2x192xf32> to vector<2x64xf32>
    %443 = arith.addf %441, %442 : vector<2x64xf32>
    %444 = arith.negf %443 : vector<2x64xf32>
    %445 = math.exp %444 : vector<2x64xf32>
    %cst_99 = arith.constant 1.000000e+00 : f32
    %446 = vector.broadcast %cst_99 : f32 to vector<2x64xf32>
    %447 = arith.addf %446, %445 : vector<2x64xf32>
    %448 = arith.divf %446, %447 : vector<2x64xf32>
    %449 = vector.extract_strided_slice %438 {offsets = [0, 64], sizes = [2, 64], strides = [1, 1]} : vector<2x192xf32> to vector<2x64xf32>
    %450 = vector.extract_strided_slice %440 {offsets = [0, 64], sizes = [2, 64], strides = [1, 1]} : vector<2x192xf32> to vector<2x64xf32>
    %451 = arith.addf %449, %450 : vector<2x64xf32>
    %452 = arith.negf %451 : vector<2x64xf32>
    %453 = math.exp %452 : vector<2x64xf32>
    %cst_100 = arith.constant 1.000000e+00 : f32
    %454 = vector.broadcast %cst_100 : f32 to vector<2x64xf32>
    %455 = arith.addf %454, %453 : vector<2x64xf32>
    %456 = arith.divf %454, %455 : vector<2x64xf32>
    %457 = vector.extract_strided_slice %438 {offsets = [0, 128], sizes = [2, 64], strides = [1, 1]} : vector<2x192xf32> to vector<2x64xf32>
    %458 = vector.extract_strided_slice %440 {offsets = [0, 128], sizes = [2, 64], strides = [1, 1]} : vector<2x192xf32> to vector<2x64xf32>
    %459 = vector.broadcast %281 : vector<1x64xf32> to vector<2x64xf32>
    %460 = arith.addf %458, %459 : vector<2x64xf32>
    %461 = arith.mulf %448, %460 : vector<2x64xf32>
    %462 = arith.addf %457, %461 : vector<2x64xf32>
    %463 = math.tanh %462 : vector<2x64xf32>
    %cst_101 = arith.constant 1.000000e+00 : f32
    %464 = vector.broadcast %cst_101 : f32 to vector<2x64xf32>
    %465 = arith.subf %464, %456 : vector<2x64xf32>
    %466 = arith.mulf %465, %463 : vector<2x64xf32>
    %467 = arith.mulf %456, %437 : vector<2x64xf32>
    %468 = arith.addf %466, %467 : vector<2x64xf32>
    %469 = vector.extract_strided_slice %279 {offsets = [12, 0], sizes = [2, 192], strides = [1, 1]} : vector<16x192xf32> to vector<2x192xf32>
    %470 = arith.truncf %468 : vector<2x64xf32> to vector<2x64xbf16>
    %cst_102 = arith.constant dense<0.000000e+00> : vector<2x192xf32>
    %471 = tpu.matmul %470, %280, %cst_102 {dimension_numbers = #tpu.dot_dimension_numbers<[1], [0], [0], [1], [0, 0, 1, 1], [], []>} : vector<2x64xbf16>, vector<64x192xbf16>, vector<2x192xf32> -> vector<2x192xf32>
    %472 = vector.extract_strided_slice %469 {offsets = [0, 0], sizes = [2, 64], strides = [1, 1]} : vector<2x192xf32> to vector<2x64xf32>
    %473 = vector.extract_strided_slice %471 {offsets = [0, 0], sizes = [2, 64], strides = [1, 1]} : vector<2x192xf32> to vector<2x64xf32>
    %474 = arith.addf %472, %473 : vector<2x64xf32>
    %475 = arith.negf %474 : vector<2x64xf32>
    %476 = math.exp %475 : vector<2x64xf32>
    %cst_103 = arith.constant 1.000000e+00 : f32
    %477 = vector.broadcast %cst_103 : f32 to vector<2x64xf32>
    %478 = arith.addf %477, %476 : vector<2x64xf32>
    %479 = arith.divf %477, %478 : vector<2x64xf32>
    %480 = vector.extract_strided_slice %469 {offsets = [0, 64], sizes = [2, 64], strides = [1, 1]} : vector<2x192xf32> to vector<2x64xf32>
    %481 = vector.extract_strided_slice %471 {offsets = [0, 64], sizes = [2, 64], strides = [1, 1]} : vector<2x192xf32> to vector<2x64xf32>
    %482 = arith.addf %480, %481 : vector<2x64xf32>
    %483 = arith.negf %482 : vector<2x64xf32>
    %484 = math.exp %483 : vector<2x64xf32>
    %cst_104 = arith.constant 1.000000e+00 : f32
    %485 = vector.broadcast %cst_104 : f32 to vector<2x64xf32>
    %486 = arith.addf %485, %484 : vector<2x64xf32>
    %487 = arith.divf %485, %486 : vector<2x64xf32>
    %488 = vector.extract_strided_slice %469 {offsets = [0, 128], sizes = [2, 64], strides = [1, 1]} : vector<2x192xf32> to vector<2x64xf32>
    %489 = vector.extract_strided_slice %471 {offsets = [0, 128], sizes = [2, 64], strides = [1, 1]} : vector<2x192xf32> to vector<2x64xf32>
    %490 = vector.broadcast %281 : vector<1x64xf32> to vector<2x64xf32>
    %491 = arith.addf %489, %490 : vector<2x64xf32>
    %492 = arith.mulf %479, %491 : vector<2x64xf32>
    %493 = arith.addf %488, %492 : vector<2x64xf32>
    %494 = math.tanh %493 : vector<2x64xf32>
    %cst_105 = arith.constant 1.000000e+00 : f32
    %495 = vector.broadcast %cst_105 : f32 to vector<2x64xf32>
    %496 = arith.subf %495, %487 : vector<2x64xf32>
    %497 = arith.mulf %496, %494 : vector<2x64xf32>
    %498 = arith.mulf %487, %468 : vector<2x64xf32>
    %499 = arith.addf %497, %498 : vector<2x64xf32>
    %500 = vector.extract_strided_slice %279 {offsets = [14, 0], sizes = [2, 192], strides = [1, 1]} : vector<16x192xf32> to vector<2x192xf32>
    %501 = arith.truncf %499 : vector<2x64xf32> to vector<2x64xbf16>
    %cst_106 = arith.constant dense<0.000000e+00> : vector<2x192xf32>
    %502 = tpu.matmul %501, %280, %cst_106 {dimension_numbers = #tpu.dot_dimension_numbers<[1], [0], [0], [1], [0, 0, 1, 1], [], []>} : vector<2x64xbf16>, vector<64x192xbf16>, vector<2x192xf32> -> vector<2x192xf32>
    %503 = vector.extract_strided_slice %500 {offsets = [0, 0], sizes = [2, 64], strides = [1, 1]} : vector<2x192xf32> to vector<2x64xf32>
    %504 = vector.extract_strided_slice %502 {offsets = [0, 0], sizes = [2, 64], strides = [1, 1]} : vector<2x192xf32> to vector<2x64xf32>
    %505 = arith.addf %503, %504 : vector<2x64xf32>
    %506 = arith.negf %505 : vector<2x64xf32>
    %507 = math.exp %506 : vector<2x64xf32>
    %cst_107 = arith.constant 1.000000e+00 : f32
    %508 = vector.broadcast %cst_107 : f32 to vector<2x64xf32>
    %509 = arith.addf %508, %507 : vector<2x64xf32>
    %510 = arith.divf %508, %509 : vector<2x64xf32>
    %511 = vector.extract_strided_slice %500 {offsets = [0, 64], sizes = [2, 64], strides = [1, 1]} : vector<2x192xf32> to vector<2x64xf32>
    %512 = vector.extract_strided_slice %502 {offsets = [0, 64], sizes = [2, 64], strides = [1, 1]} : vector<2x192xf32> to vector<2x64xf32>
    %513 = arith.addf %511, %512 : vector<2x64xf32>
    %514 = arith.negf %513 : vector<2x64xf32>
    %515 = math.exp %514 : vector<2x64xf32>
    %cst_108 = arith.constant 1.000000e+00 : f32
    %516 = vector.broadcast %cst_108 : f32 to vector<2x64xf32>
    %517 = arith.addf %516, %515 : vector<2x64xf32>
    %518 = arith.divf %516, %517 : vector<2x64xf32>
    %519 = vector.extract_strided_slice %500 {offsets = [0, 128], sizes = [2, 64], strides = [1, 1]} : vector<2x192xf32> to vector<2x64xf32>
    %520 = vector.extract_strided_slice %502 {offsets = [0, 128], sizes = [2, 64], strides = [1, 1]} : vector<2x192xf32> to vector<2x64xf32>
    %521 = vector.broadcast %281 : vector<1x64xf32> to vector<2x64xf32>
    %522 = arith.addf %520, %521 : vector<2x64xf32>
    %523 = arith.mulf %510, %522 : vector<2x64xf32>
    %524 = arith.addf %519, %523 : vector<2x64xf32>
    %525 = math.tanh %524 : vector<2x64xf32>
    %cst_109 = arith.constant 1.000000e+00 : f32
    %526 = vector.broadcast %cst_109 : f32 to vector<2x64xf32>
    %527 = arith.subf %526, %518 : vector<2x64xf32>
    %528 = arith.mulf %527, %525 : vector<2x64xf32>
    %529 = arith.mulf %518, %499 : vector<2x64xf32>
    %530 = arith.addf %528, %529 : vector<2x64xf32>
    %531 = vector.extract_strided_slice %530 {offsets = [0, 0], sizes = [2, 32], strides = [1, 1]} : vector<2x64xf32> to vector<2x32xf32>
    %532 = vector.extract_strided_slice %313 {offsets = [0, 32], sizes = [2, 32], strides = [1, 1]} : vector<2x64xf32> to vector<2x32xf32>
    %533 = tpu.concatenate %531, %532 in 1 : vector<2x32xf32>, vector<2x32xf32> -> vector<2x64xf32>
    %534 = arith.truncf %533 : vector<2x64xf32> to vector<2x64xbf16>
    %c0_110 = arith.constant 0 : index
    %c0_111 = arith.constant 0 : index
    %535 = vector.load %arg9[%c0_110, %c0_111] : memref<64x256xbf16, #tpu.memory_space<vmem>>, vector<64x256xbf16>
    %cst_112 = arith.constant dense<0.000000e+00> : vector<2x256xf32>
    %536 = tpu.matmul %534, %535, %cst_112 {dimension_numbers = #tpu.dot_dimension_numbers<[1], [0], [0], [1], [0, 0, 1, 1], [], []>} : vector<2x64xbf16>, vector<64x256xbf16>, vector<2x256xf32> -> vector<2x256xf32>
    %c0_113 = arith.constant 0 : index
    %c0_114 = arith.constant 0 : index
    %537 = vector.load %arg10[%c0_113, %c0_114] : memref<1x256xf32, #tpu.memory_space<vmem>>, vector<1x256xf32>
    %538 = vector.broadcast %537 : vector<1x256xf32> to vector<2x256xf32>
    %539 = arith.addf %536, %538 : vector<2x256xf32>
    %cst_115 = arith.constant 0.000000e+00 : f32
    %540 = vector.broadcast %cst_115 : f32 to vector<2x256xf32>
    %541 = arith.maximumf %539, %540 : vector<2x256xf32>
    %542 = arith.truncf %541 : vector<2x256xf32> to vector<2x256xbf16>
    %c0_116 = arith.constant 0 : index
    %c0_117 = arith.constant 0 : index
    %543 = vector.load %arg11[%c0_116, %c0_117] : memref<256x2xbf16, #tpu.memory_space<vmem>>, vector<256x2xbf16>
    %cst_118 = arith.constant dense<0.000000e+00> : vector<2x2xf32>
    %544 = tpu.matmul %542, %543, %cst_118 {dimension_numbers = #tpu.dot_dimension_numbers<[1], [0], [0], [1], [0, 0, 1, 1], [], []>} : vector<2x256xbf16>, vector<256x2xbf16>, vector<2x2xf32> -> vector<2x2xf32>
    %c0_119 = arith.constant 0 : index
    %c0_120 = arith.constant 0 : index
    %545 = vector.load %arg12[%c0_119, %c0_120] : memref<1x2xf32, #tpu.memory_space<vmem>>, vector<1x2xf32>
    %546 = vector.broadcast %545 : vector<1x2xf32> to vector<2x2xf32>
    %547 = arith.addf %544, %546 : vector<2x2xf32>
    %c0_121 = arith.constant 0 : index
    %c0_122 = arith.constant 0 : index
    %548 = vector.load %arg13[%c0_121, %c0_122] : memref<2x2xf32, #tpu.memory_space<vmem>>, vector<2x2xf32>
    tpu.vector_store %arg13[%c0_121, %c0_122], %547 {strides = array<i32>} : memref<2x2xf32, #tpu.memory_space<vmem>>, vector<2x2xf32>,
    return
  }
}

</mosaic_0001>

<bundles_post_ra>
// kernel: tpu_custom_call.1
= control target key start
LH: loop header
LB: loop body
LE: loop exit
PB: predicated region body
PF: predicated region fallthrough
CT: control target
= control target key end

     0   :  { %v2309_v2 = vmov 0   ;;  %vm113_vm0 = vcmask 523264   ;;  %s2991_s0 = inlined_call_operand.vmem [shape: bf16[16,64], index: 0, kind: input, shape index: {}]   ;;  %s2992_s1 = inlined_call_operand.vmem [shape: bf16[64,192], index: 1, kind: input, shape index: {}]   ;;  %s2993_s2 = inlined_call_operand.vmem [shape: f32[1,192], index: 2, kind: input, shape index: {}]   ;;  %s2994_s3 = inlined_call_operand.vmem [shape: bf16[64,192], index: 3, kind: input, shape index: {}]   ;;  %s2995_s4 = inlined_call_operand.vmem [shape: f32[1,64], index: 4, kind: input, shape index: {}]   ;;  %s2996_s5 = inlined_call_operand.vmem [shape: bf16[128,192], index: 5, kind: input, shape index: {}]   ;;  %s2997_s6 = inlined_call_operand.vmem [shape: f32[1,192], index: 6, kind: input, shape index: {}]   ;;  %s2998_s7 = inlined_call_operand.vmem [shape: bf16[64,192], index: 7, kind: input, shape index: {}]   ;;  %s2999_s8 = inlined_call_operand.vmem [shape: f32[1,64], index: 8, kind: input, shape index: {}]   ;;  %s3000_s9 = inlined_call_operand.vmem [shape: bf16[64,256], index: 9, kind: input, shape index: {}]   ;;  %s3001_s10 = inlined_call_operand.vmem [shape: f32[1,256], index: 10, kind: input, shape index: {}]   ;;  %s3002_s11 = inlined_call_operand.vmem [shape: bf16[256,2], index: 11, kind: input, shape index: {}]   ;;  %s3003_s12 = inlined_call_operand.vmem [shape: f32[1,2], index: 12, kind: input, shape index: {}]   ;;  %s3004_s13 = inlined_call_operand.hbm [shape: f32[2,2], index: 13, kind: output, shape index: {}]  }
   0x1   :  { %v2100_v0 = vld [vmem:[%s2992_s1 + $0x4] ss:$8 sps:$4 sm:$0xff]   ;;  %v2102_v1 = vld [vmem:[%s2992_s1] ss:$8 sps:$4 sm:$0xff]   ;;  %149 = vmatprep.mubr.bf16.mxu1 %v2309_v2  ;;  %325 = vmatprep.mubr.bf16.mxu0 %v2309_v2  ;;  %v2103_v3 = vld [vmem:[%s2992_s1 + $0x14] ss:$8 sps:$4 sm:$0xff]  }
   0x2   :  { %117 = vmatprep.subr.bf16.mxu1 %v2100_v0  ;;  %v2105_v4 = vld [vmem:[%s2992_s1 + $0x10] ss:$8 sps:$4 sm:$0xff]   ;;  %v2106_v5 = vld [vmem:[%s2992_s1 + $0x24] ss:$8 sps:$4 sm:$0xff]   ;;  %v2108_v6 = vld [vmem:[%s2992_s1 + $0x20] ss:$8 sps:$4 sm:$0xff]  }
   0x3   :  { %118 = vmatpush1.bf16.msra.mxu1 %v2102_v1  ;;  %v2405_v7 = vld [vmem:[%s2994_s3 + $0x4] ss:$8 sps:$4 sm:$0xff]   ;;  %v2109_v8 = vld [vmem:[%s2992_s1 + $0x34] ss:$8 sps:$4 sm:$0xff]   ;;  %v2413_v9 = vld [vmem:[%s2994_s3] ss:$8 sps:$4 sm:$0xff]  }
   0x4   :  { %119 = vmatprep.subr.bf16.mxu1 %v2103_v3  ;;  %v2418_v10 = vld [vmem:[%s2994_s3 + $0x14] ss:$8 sps:$4 sm:$0xff]   ;;  %293 = vmatprep.subr.bf16.mxu0 %v2405_v7  ;;  %v2111_v11 = vld [vmem:[%s2992_s1 + $0x30] ss:$8 sps:$4 sm:$0xff]   ;;  %v2433_v13 = vld [vmem:[%s2994_s3 + $0x24] ss:$8 sps:$4 sm:$0xff]  }
   0x5   :  { %294 = vmatpush1.bf16.msra.mxu0 %v2413_v9  ;;  %v2428_v12 = vld [vmem:[%s2994_s3 + $0x10] ss:$8 sps:$4 sm:$0xff]   ;;  %v2112_v14 = vld [vmem:[%s2991_s0] sm:$0xff]   ;;  %v2450_v16 = vld [vmem:[%s2994_s3 + $0x34] ss:$8 sps:$4 sm:$0xff]  }
   0x6   :  { %295 = vmatprep.subr.bf16.mxu0 %v2418_v10  ;;  %v2442_v15 = vld [vmem:[%s2994_s3 + $0x20] ss:$8 sps:$4 sm:$0xff]   ;;  %v2456_v17 = vld [vmem:[%s2994_s3 + $0x30] ss:$8 sps:$4 sm:$0xff]  }
   0x7   :  { %120 = vmatpush1.bf16.msra.mxu1 %v2105_v4 }
   0x8   :  { %121 = vmatprep.subr.bf16.mxu1 %v2106_v5 }
   0x9   :  { %296 = vmatpush1.bf16.msra.mxu0 %v2428_v12 }
   0xa   :  { %297 = vmatprep.subr.bf16.mxu0 %v2433_v13 }
   0xb   :  { %122 = vmatpush1.bf16.msra.mxu1 %v2108_v6 }
   0xc   :  { %123 = vmatprep.subr.bf16.mxu1 %v2109_v8 }
   0xd   :  { %298 = vmatpush1.bf16.msra.mxu0 %v2442_v15 }
   0xe   :  { %299 = vmatprep.subr.bf16.mxu0 %v2450_v16 }
   0xf   :  { %124 = vmatpush1.bf16.msra.mxu1 %v2111_v11 }
  0x10   :  { %212 = vmatprep.subr.bf16.mxu1 %v2405_v7 }
  0x11   :  { %300 = vmatpush1.bf16.msra.mxu0 %v2456_v17 }
  0x12   :  { %1979 = vmatmul.mubr.msk.bf16.vlgmr.msra.gmra.mrb[0].mxu1 %vm113_vm0, %v2112_v14  ;;  %461 = vmatprep.subr.bf16.mxu0 %v2405_v7 }
  0x13   :  { %213 = vmatpush1.bf16.msra.mxu1 %v2413_v9  ;;  %244 = vmatprep.mubr.bf16.mxu1 %v2309_v2 }
  0x14   :  { %214 = vmatprep.subr.bf16.mxu1 %v2418_v10 }
  0x17   :  { %215 = vmatpush1.bf16.msra.mxu1 %v2428_v12 }
  0x18   :  { %216 = vmatprep.subr.bf16.mxu1 %v2433_v13 }
  0x1b   :  { %217 = vmatpush1.bf16.msra.mxu1 %v2442_v15 }
  0x1c   :  { %218 = vmatprep.subr.bf16.mxu1 %v2450_v16 }
  0x1f   :  { %219 = vmatpush1.bf16.msra.mxu1 %v2456_v17 }
  0x20   :  { %377 = vmatprep.subr.bf16.mxu1 %v2405_v7 }
  0x21   :  { %18 = vsyncpa [#allocation5], 0  ;;  %v58_v18 = vlaneseq  ;;  %v56_v21 = vld [vmem:[%s2993_s2] sm:$0x3]  ;;  %s2310_s25 = smov 64   ;;  %vm284_vm1 = vcmask 1041920  }
  0x22   :  { %245 = vmatmul.mubr.bf16.vlgmr.msra.gmra.mrb[4].mxu1 %v2309_v2  ;;  %v2500_v40 = vld [vmem:[%s2995_s4] ss:$0 sm:$0xff]  ;;  %vm367_vm2 = vcmask 1043970   ;;  %vm451_vm3 = vcmask 1046020   ;;  %vm535_vm4 = vcmask 1048070   ;;  %vm282_vm5 = vcmask 517120  }
  0x23   :  { %378 = vmatpush1.bf16.msra.mxu1 %v2413_v9  ;;  %409 = vmatprep.mubr.bf16.mxu1 %v2309_v2  ;;  %v59_v19 = vshrl.u32 %v58_v18, 7  ;;  %vm449_vm6 = vcmask 521220   ;;  %vm365_vm7 = vcmask 519170   ;;  %vm533_vm8 = vcmask 523270  }
  0x24   :  { %379 = vmatprep.subr.bf16.mxu1 %v2418_v10  ;;  %vm1666_vm9 = vcmask 261120   ;;  %vm1954_vm10 = vcmask 9216  }
  0x25   :  { %v2481_v20 = vsub.s32 0, %v59_v19  ;;  %v2486_v22 = vsub.s32 1, %v59_v19 }
  0x27   :  { %380 = vmatpush1.bf16.msra.mxu1 %v2428_v12  ;;  %v61_v23 = vrot.slane %v56_v21, %v2481_v20  ;;  %v65_v26 = vrot.slane %v56_v21, %v2486_v22 }
  0x28   :  { %381 = vmatprep.subr.bf16.mxu1 %v2433_v13 }
  0x2b   :  { %382 = vmatpush1.bf16.msra.mxu1 %v2442_v15 }
  0x2c   :  { %383 = vmatprep.subr.bf16.mxu1 %v2450_v16 }
  0x2f   :  { %384 = vmatpush1.bf16.msra.mxu1 %v2456_v17 }
  0x30   :  { %545 = vmatprep.subr.bf16.mxu1 %v2405_v7 }
  0xe5   :  { %v151_v24 = vpop.f32.mrb[0].mxu1 }
  0xe6   :  { %v153_v25 = vpop.f32.mrb[1].mxu1  ;;  %v2494_v31 = vadd.f32 %v151_v24, %v61_v23 }
  0xe7   :  { %v155_v27 = vpop.f32.mrb[2].mxu1  ;;  %v2503_v43 = vadd.f32 %v153_v25, %v65_v26 }
  0xe8   :  { %v2490_v28 = vadd.f32 %v155_v27, %v61_v23  ;;  %v157_v29 = vpop.f32.mrb[3].mxu1 }
  0xe9   :  { %v2492_v30 = vadd.f32 %v157_v29, %v65_v26 }
  0xf5   :  { %v246_v32 = vpop.f32.mrb[4].mxu1 }
  0xf6   :  { %v253_v33 = vadd.f32 %v246_v32, %v2494_v31  ;;  %v248_v34 = vpop.f32.mrb[5].mxu1 }
  0xf7   :  { %v250_v35 = vpop.f32.mrb[6].mxu1  ;;  %v266_v41 = vadd.f32 %v2500_v40, %v248_v34 }
  0xf8   :  { %v1988_v36 = vmul.f32 -1.442695, %v253_v33  ;;  %v251_v37 = vpop.f32.mrb[7].mxu1 }
  0xfa   :  { %2189 = vpow2.f32 %v1988_v36 }
 0x104   :  { %v2190_v38 = vpop.eup %2189 }
 0x105   :  { %v257_v39 = vadd.f32 1.0, %v2190_v38 }
 0x107   :  { %2191 = vrcp.f32 %v257_v39 }
 0x111   :  { %v2192_v42 = vpop.eup %2191 }
 0x112   :  { %v267_v44 = vmul.f32 %v2192_v42, %v266_v41  ;;  %v270_v47 = vsub.f32 1.0, %v2192_v42  ;;  %v276_v49 = vmul.f32 0.0, %v2192_v42 }
 0x114   :  { %v268_v45 = vadd.f32 %v267_v44, %v2503_v43 }
 0x116   :  { %2193 = vtanh.f32 %v268_v45 }
 0x120   :  { %v2194_v46 = vpop.eup %2193 }
 0x121   :  { %272 = vrot.lane.b32.xlu0 %v2194_v46, %s2310_s25 }
 0x193   :  { %v273_v48 = vpop.permute.xlu0 %272 }
 0x194   :  { %v275_v50 = vmul.f32 %v273_v48, %v270_v47 }
 0x196   :  { %v2507_v51 = vadd.f32 %v276_v49, %v275_v50 }
 0x198   :  { %v286_v52 = vpack.c.bf16 %v2507_v51, %v2507_v51  ;;  %285 = vst.msk [vmem:[#allocation2 + $0xe] sm:$0x3] %vm284_vm1, %v2507_v51  ;;  %v357_v8 = vrot.slane %v2507_v51, 6 }
 0x19a   :  { %288 = vrot.lane.b32.xlu0 %v286_v52, %s2310_s25 }
 0x20c   :  { %v289_v53 = vpop.permute.xlu0 %288 }
 0x20d   :  { %1990 = vmatmul.mubr.msk.bf16.vlgmr.msra.gmra.mrb[0].mxu0 %vm113_vm0, %v289_v53 }
 0x20e   :  { %462 = vmatpush1.bf16.msra.mxu0 %v2413_v9  ;;  %493 = vmatprep.mubr.bf16.mxu0 %v2309_v2 }
 0x20f   :  { %463 = vmatprep.subr.bf16.mxu0 %v2418_v10 }
 0x212   :  { %464 = vmatpush1.bf16.msra.mxu0 %v2428_v12 }
 0x213   :  { %465 = vmatprep.subr.bf16.mxu0 %v2433_v13 }
 0x216   :  { %466 = vmatpush1.bf16.msra.mxu0 %v2442_v15 }
 0x217   :  { %467 = vmatprep.subr.bf16.mxu0 %v2450_v16 }
 0x21a   :  { %468 = vmatpush1.bf16.msra.mxu0 %v2456_v17 }
 0x21b   :  { %620 = vmatprep.subr.bf16.mxu0 %v2405_v7 }
 0x2e0   :  { %v327_v54 = vpop.f32.mrb[0].mxu0 }
 0x2e1   :  { %v335_v55 = vrot.slane %v327_v54, 6  ;;  %v329_v56 = vpop.f32.mrb[1].mxu0 }
 0x2e2   :  { %v331_v57 = vpop.f32.mrb[2].mxu0  ;;  %v344_v63 = vadd.f32 %v2500_v40, %v329_v56 }
 0x2e3   :  { %v337_v58 = vadd.f32 %v335_v55, %v2494_v31  ;;  %v332_v59 = vpop.f32.mrb[3].mxu0 }
 0x2e4   :  { %v346_v0 = vrot.slane %v344_v63, 6 }
 0x2e5   :  { %v1991_v60 = vmul.f32 -1.442695, %v337_v58 }
 0x2e7   :  { %2195 = vpow2.f32 %v1991_v60 }
 0x2f1   :  { %v2196_v61 = vpop.eup %2195 }
 0x2f2   :  { %v341_v62 = vadd.f32 1.0, %v2196_v61 }
 0x2f4   :  { %2197 = vrcp.f32 %v341_v62 }
 0x2fe   :  { %v2198_v1 = vpop.eup %2197 }
 0x2ff   :  { %v348_v3 = vmul.f32 %v2198_v1, %v346_v0  ;;  %v351_v6 = vsub.f32 1.0, %v2198_v1  ;;  %v359_v14 = vmul.f32 %v2198_v1, %v357_v8 }
 0x301   :  { %v349_v4 = vadd.f32 %v348_v3, %v2503_v43 }
 0x303   :  { %2199 = vtanh.f32 %v349_v4 }
 0x30d   :  { %v2200_v5 = vpop.eup %2199 }
 0x30e   :  { %353 = vrot.lane.b32.xlu1 %v2200_v5, %s2310_s25 }
 0x380   :  { %v354_v11 = vpop.permute.xlu1 %353 }
 0x381   :  { %v356_v18 = vmul.f32 %v354_v11, %v351_v6 }
 0x383   :  { %v2529_v19 = vadd.f32 %v359_v14, %v356_v18 }
 0x385   :  { %v369_v21 = vpack.c.bf16 %v2529_v19, %v2529_v19  ;;  %368 = vst.msk [vmem:[#allocation2 + $0xa] sm:$0xc] %vm367_vm2, %v2529_v19  ;;  %v441_v46 = vrot.slane %v2529_v19, 6 }
 0x387   :  { %v371_v23 = vrot.slane %v369_v21, 1 }
 0x389   :  { %372 = vrot.lane.b32.xlu1 %v371_v23, %s2310_s25 }
 0x3fb   :  { %v373_v24 = vpop.permute.xlu1 %372 }
 0x3fc   :  { %1992 = vmatmul.mubr.msk.bf16.vlgmr.msra.gmra.mrb[8].mxu1 %vm113_vm0, %v373_v24 }
 0x3fd   :  { %546 = vmatpush1.bf16.msra.mxu1 %v2413_v9  ;;  %577 = vmatprep.mubr.bf16.mxu1 %v2309_v2 }
 0x3fe   :  { %547 = vmatprep.subr.bf16.mxu1 %v2418_v10 }
 0x401   :  { %548 = vmatpush1.bf16.msra.mxu1 %v2428_v12 }
 0x402   :  { %549 = vmatprep.subr.bf16.mxu1 %v2433_v13 }
 0x405   :  { %550 = vmatpush1.bf16.msra.mxu1 %v2442_v15 }
 0x406   :  { %551 = vmatprep.subr.bf16.mxu1 %v2450_v16 }
 0x409   :  { %552 = vmatpush1.bf16.msra.mxu1 %v2456_v17 }
 0x40a   :  { %702 = vmatprep.subr.bf16.mxu1 %v2405_v7 }
 0x4cf   :  { %v411_v25 = vpop.f32.mrb[8].mxu1 }
 0x4d0   :  { %v419_v26 = vrot.slane %v411_v25, 4  ;;  %v413_v27 = vpop.f32.mrb[9].mxu1 }
 0x4d1   :  { %v415_v29 = vpop.f32.mrb[10].mxu1  ;;  %v428_v37 = vadd.f32 %v2500_v40, %v413_v27 }
 0x4d2   :  { %v421_v32 = vadd.f32 %v419_v26, %v2494_v31  ;;  %v416_v33 = vpop.f32.mrb[11].mxu1 }
 0x4d3   :  { %v430_v38 = vrot.slane %v428_v37, 4 }
 0x4d4   :  { %v1993_v34 = vmul.f32 -1.442695, %v421_v32 }
 0x4d6   :  { %2201 = vpow2.f32 %v1993_v34 }
 0x4e0   :  { %v2202_v35 = vpop.eup %2201 }
 0x4e1   :  { %v425_v36 = vadd.f32 1.0, %v2202_v35 }
 0x4e3   :  { %2203 = vrcp.f32 %v425_v36 }
 0x4ed   :  { %v2204_v39 = vpop.eup %2203 }
 0x4ee   :  { %v432_v41 = vmul.f32 %v2204_v39, %v430_v38  ;;  %v435_v45 = vsub.f32 1.0, %v2204_v39  ;;  %v443_v48 = vmul.f32 %v2204_v39, %v441_v46 }
 0x4f0   :  { %v433_v42 = vadd.f32 %v432_v41, %v2503_v43 }
 0x4f2   :  { %2205 = vtanh.f32 %v433_v42 }
 0x4fc   :  { %v2206_v44 = vpop.eup %2205 }
 0x4fd   :  { %437 = vrot.lane.b32.xlu0 %v2206_v44, %s2310_s25 }
 0x56f   :  { %v438_v47 = vpop.permute.xlu0 %437 }
 0x570   :  { %v440_v49 = vmul.f32 %v438_v47, %v435_v45 }
 0x572   :  { %v2551_v50 = vadd.f32 %v443_v48, %v440_v49 }
 0x574   :  { %v453_v52 = vpack.c.bf16 %v2551_v50, %v2551_v50  ;;  %452 = vst.msk [vmem:[#allocation2 + $0x6] sm:$0x30] %vm451_vm3, %v2551_v50 }
 0x576   :  { %v455_v53 = vrot.slane %v453_v52, 2 }
 0x578   :  { %456 = vrot.lane.b32.xlu1 %v455_v53, %s2310_s25 }
 0x5ea   :  { %v457_v54 = vpop.permute.xlu1 %456 }
 0x5eb   :  { %1994 = vmatmul.mubr.msk.bf16.vlgmr.msra.gmra.mrb[4].mxu0 %vm113_vm0, %v457_v54 }
 0x5ec   :  { %621 = vmatpush1.bf16.msra.mxu0 %v2413_v9  ;;  %652 = vmatprep.mubr.bf16.mxu0 %v2309_v2 }
 0x5ed   :  { %622 = vmatprep.subr.bf16.mxu0 %v2418_v10 }
 0x5f0   :  { %623 = vmatpush1.bf16.msra.mxu0 %v2428_v12 }
 0x5f1   :  { %624 = vmatprep.subr.bf16.mxu0 %v2433_v13 }
 0x5f4   :  { %625 = vmatpush1.bf16.msra.mxu0 %v2442_v15 }
 0x5f5   :  { %626 = vmatprep.subr.bf16.mxu0 %v2450_v16 }
 0x5f8   :  { %627 = vmatpush1.bf16.msra.mxu0 %v2456_v17 }
 0x5f9   :  { %784 = vmatprep.subr.bf16.mxu0 %v2405_v7 }
 0x6be   :  { %v495_v55 = vpop.f32.mrb[4].mxu0 }
 0x6bf   :  { %v503_v56 = vrot.slane %v495_v55, 2  ;;  %v497_v57 = vpop.f32.mrb[5].mxu0 }
 0x6c0   :  { %v499_v58 = vpop.f32.mrb[6].mxu0  ;;  %v512_v0 = vadd.f32 %v2500_v40, %v497_v57 }
 0x6c1   :  { %v505_v59 = vadd.f32 %v503_v56, %v2494_v31  ;;  %v500_v60 = vpop.f32.mrb[7].mxu0  ;;  %v525_v31 = vrot.slane %v2551_v50, 6 }
 0x6c2   :  { %v514_v1 = vrot.slane %v512_v0, 2 }
 0x6c3   :  { %v1995_v61 = vmul.f32 -1.442695, %v505_v59 }
 0x6c5   :  { %2207 = vpow2.f32 %v1995_v61 }
 0x6cf   :  { %v2208_v62 = vpop.eup %2207 }
 0x6d0   :  { %v509_v63 = vadd.f32 1.0, %v2208_v62 }
 0x6d2   :  { %2209 = vrcp.f32 %v509_v63 }
 0x6dc   :  { %v2210_v3 = vpop.eup %2209 }
 0x6dd   :  { %v516_v4 = vmul.f32 %v2210_v3, %v514_v1  ;;  %v519_v6 = vsub.f32 1.0, %v2210_v3  ;;  %v527_v11 = vmul.f32 %v2210_v3, %v525_v31 }
 0x6df   :  { %v517_v5 = vadd.f32 %v516_v4, %v2503_v43 }
 0x6e1   :  { %2211 = vtanh.f32 %v517_v5 }
 0x6eb   :  { %v2212_v7 = vpop.eup %2211 }
 0x6ec   :  { %521 = vrot.lane.b32.xlu0 %v2212_v7, %s2310_s25 }
 0x75e   :  { %v522_v8 = vpop.permute.xlu0 %521 }
 0x75f   :  { %v524_v14 = vmul.f32 %v522_v8, %v519_v6 }
 0x761   :  { %v2573_v18 = vadd.f32 %v527_v11, %v524_v14 }
 0x763   :  { %v537_v21 = vpack.c.bf16 %v2573_v18, %v2573_v18  ;;  %536 = vst.msk [vmem:[#allocation2 + $0x2] sm:$0xc0] %vm535_vm4, %v2573_v18  ;;  %v603_v42 = vrot.slane %v2573_v18, 6 }
 0x765   :  { %v539_v43 = vrot.slane %v537_v21, 3 }
 0x767   :  { %540 = vrot.lane.b32.xlu1 %v539_v43, %s2310_s25 }
 0x7d9   :  { %v541_v23 = vpop.permute.xlu1 %540 }
 0x7da   :  { %1996 = vmatmul.mubr.msk.bf16.vlgmr.msra.gmra.mrb[12].mxu1 %vm113_vm0, %v541_v23 }
 0x7db   :  { %703 = vmatpush1.bf16.msra.mxu1 %v2413_v9  ;;  %734 = vmatprep.mubr.bf16.mxu1 %v2309_v2 }
 0x7dc   :  { %704 = vmatprep.subr.bf16.mxu1 %v2418_v10 }
 0x7df   :  { %705 = vmatpush1.bf16.msra.mxu1 %v2428_v12 }
 0x7e0   :  { %706 = vmatprep.subr.bf16.mxu1 %v2433_v13 }
 0x7e3   :  { %707 = vmatpush1.bf16.msra.mxu1 %v2442_v15 }
 0x7e4   :  { %708 = vmatprep.subr.bf16.mxu1 %v2450_v16 }
 0x7e7   :  { %709 = vmatpush1.bf16.msra.mxu1 %v2456_v17 }
 0x8ad   :  { %v579_v24 = vpop.f32.mrb[12].mxu1 }
 0x8ae   :  { %v586_v25 = vadd.f32 %v579_v24, %v2490_v28  ;;  %v581_v26 = vpop.f32.mrb[13].mxu1 }
 0x8af   :  { %v583_v27 = vpop.f32.mrb[14].mxu1  ;;  %v593_v35 = vadd.f32 %v2500_v40, %v581_v26 }
 0x8b0   :  { %v1997_v29 = vmul.f32 -1.442695, %v586_v25  ;;  %v584_v32 = vpop.f32.mrb[15].mxu1 }
 0x8b2   :  { %2213 = vpow2.f32 %v1997_v29 }
 0x8bc   :  { %v2214_v33 = vpop.eup %2213 }
 0x8bd   :  { %v590_v34 = vadd.f32 1.0, %v2214_v33 }
 0x8bf   :  { %2215 = vrcp.f32 %v590_v34 }
 0x8c9   :  { %v2216_v36 = vpop.eup %2215 }
 0x8ca   :  { %v594_v37 = vmul.f32 %v2216_v36, %v593_v35  ;;  %v597_v41 = vsub.f32 1.0, %v2216_v36  ;;  %v605_v45 = vmul.f32 %v2216_v36, %v603_v42 }
 0x8cc   :  { %v595_v38 = vadd.f32 %v594_v37, %v2492_v30 }
 0x8ce   :  { %2217 = vtanh.f32 %v595_v38 }
 0x8d8   :  { %v2218_v39 = vpop.eup %2217 }
 0x8d9   :  { %599 = vrot.lane.b32.xlu0 %v2218_v39, %s2310_s25 }
 0x94b   :  { %v600_v44 = vpop.permute.xlu0 %599 }
 0x94c   :  { %v602_v46 = vmul.f32 %v600_v44, %v597_v41 }
 0x94e   :  { %v2594_v47 = vadd.f32 %v605_v45, %v602_v46 }
 0x950   :  { %v613_v48 = vpack.c.bf16 %v2594_v47, %v2594_v47  ;;  %v684_v61 = vrot.slane %v2594_v47, 6 }
 0x952   :  { %615 = vrot.lane.b32.xlu1 %v613_v48, %s2310_s25 }
 0x9c4   :  { %v616_v49 = vpop.permute.xlu1 %615 }
 0x9c5   :  { %1998 = vmatmul.mubr.msk.bf16.vlgmr.msra.gmra.mrb[8].mxu0 %vm113_vm0, %v616_v49 }
 0x9c6   :  { %785 = vmatpush1.bf16.msra.mxu0 %v2413_v9  ;;  %816 = vmatprep.mubr.bf16.mxu0 %v2309_v2 }
 0x9c7   :  { %786 = vmatprep.subr.bf16.mxu0 %v2418_v10 }
 0x9ca   :  { %787 = vmatpush1.bf16.msra.mxu0 %v2428_v12 }
 0x9cb   :  { %788 = vmatprep.subr.bf16.mxu0 %v2433_v13 }
 0x9ce   :  { %789 = vmatpush1.bf16.msra.mxu0 %v2442_v15 }
 0x9cf   :  { %790 = vmatprep.subr.bf16.mxu0 %v2450_v16 }
 0x9d2   :  { %791 = vmatpush1.bf16.msra.mxu0 %v2456_v17 }
 0xa98   :  { %v654_v52 = vpop.f32.mrb[8].mxu0 }
 0xa99   :  { %v662_v53 = vrot.slane %v654_v52, 6  ;;  %v656_v54 = vpop.f32.mrb[9].mxu0 }
 0xa9a   :  { %v658_v55 = vpop.f32.mrb[10].mxu0  ;;  %v671_v12 = vadd.f32 %v2500_v40, %v656_v54 }
 0xa9b   :  { %v664_v9 = vadd.f32 %v662_v53, %v2490_v28  ;;  %v659_v56 = vpop.f32.mrb[11].mxu0 }
 0xa9c   :  { %v673_v13 = vrot.slane %v671_v12, 6 }
 0xa9d   :  { %v1999_v57 = vmul.f32 -1.442695, %v664_v9 }
 0xa9f   :  { %2219 = vpow2.f32 %v1999_v57 }
 0xaa9   :  { %v2220_v10 = vpop.eup %2219 }
 0xaaa   :  { %v668_v58 = vadd.f32 1.0, %v2220_v10 }
 0xaac   :  { %2221 = vrcp.f32 %v668_v58 }
 0xab6   :  { %v2222_v15 = vpop.eup %2221 }
 0xab7   :  { %v675_v59 = vmul.f32 %v2222_v15, %v673_v13  ;;  %v678_v60 = vsub.f32 1.0, %v2222_v15  ;;  %v686_v63 = vmul.f32 %v2222_v15, %v684_v61  ;;  %v2678_v61 = vld [vmem:[%s2998_s7 + $0x14] ss:$8 sps:$4 sm:$0xff]  }
 0xab9   :  { %v676_v16 = vadd.f32 %v675_v59, %v2492_v30  ;;  %v2127_v59 = vld [vmem:[%s2996_s5 + $0x4] ss:$8 sps:$4 sm:$0xff]  }
 0xaba   :  { %969 = vmatprep.subr.bf16.mxu1 %v2127_v59 }
 0xabb   :  { %2223 = vtanh.f32 %v676_v16  ;;  %v2128_v16 = vld [vmem:[%s2996_s5 + $0x10] ss:$8 sps:$4 sm:$0xff]  }
 0xac5   :  { %v2224_v17 = vpop.eup %2223 }
 0xac6   :  { %680 = vrot.lane.b32.xlu0 %v2224_v17, %s2310_s25  ;;  %v2669_v17 = vld [vmem:[%s2998_s7] ss:$8 sps:$4 sm:$0xff]  }
 0xb38   :  { %v681_v62 = vpop.permute.xlu0 %680 }
 0xb39   :  { %v683_v0 = vmul.f32 %v681_v62, %v678_v60  ;;  %v2133_v60 = vld [vmem:[%s2996_s5 + $0x24] ss:$8 sps:$4 sm:$0xff]   ;;  %v2686_v62 = vld [vmem:[%s2998_s7 + $0x10] ss:$8 sps:$4 sm:$0xff]  }
 0xb3b   :  { %v2613_v1 = vadd.f32 %v686_v63, %v683_v0  ;;  %v2131_v63 = vld [vmem:[%s2996_s5 + $0x20] ss:$8 sps:$4 sm:$0xff]   ;;  %v2136_v0 = vld [vmem:[%s2996_s5 + $0x34] ss:$8 sps:$4 sm:$0xff]  }
 0xb3d   :  { %v694_v3 = vpack.c.bf16 %v2613_v1, %v2613_v1  ;;  %v766_v34 = vrot.slane %v2613_v1, 6 }
 0xb3f   :  { %v696_v4 = vrot.slane %v694_v3, 1  ;;  %v2141_v3 = vld [vmem:[%s2996_s5 + $0x44] ss:$8 sps:$4 sm:$0xff]  }
 0xb41   :  { %697 = vrot.lane.b32.xlu1 %v696_v4, %s2310_s25  ;;  %v2147_v4 = vld [vmem:[%s2996_s5 + $0x54] ss:$8 sps:$4 sm:$0xff]  }
 0xbb3   :  { %v698_v5 = vpop.permute.xlu1 %697 }
 0xbb4   :  { %2000 = vmatmul.mubr.msk.bf16.vlgmr.msra.gmra.mrb[16].mxu1 %vm113_vm0, %v698_v5  ;;  %v2145_v5 = vld [vmem:[%s2996_s5 + $0x50] ss:$8 sps:$4 sm:$0xff]  }
 0xbb5   :  { %1001 = vmatprep.mubr.bf16.mxu1 %v2309_v2 }
 0xc87   :  { %v736_v7 = vpop.f32.mrb[16].mxu1 }
 0xc88   :  { %v744_v6 = vrot.slane %v736_v7, 4  ;;  %v738_v31 = vpop.f32.mrb[17].mxu1  ;;  %v2151_v7 = vld [vmem:[%s2996_s5 + $0x60] ss:$8 sps:$4 sm:$0xff]  }
 0xc89   :  { %v740_v8 = vpop.f32.mrb[18].mxu1  ;;  %v753_v24 = vadd.f32 %v2500_v40, %v738_v31  ;;  %v2729_v31 = vld [vmem:[%s2998_s7 + $0x20] ss:$8 sps:$4 sm:$0xff]  }
 0xc8a   :  { %v746_v11 = vadd.f32 %v744_v6, %v2490_v28  ;;  %v741_v14 = vpop.f32.mrb[19].mxu1  ;;  %v2153_v6 = vld [vmem:[%s2996_s5 + $0x64] ss:$8 sps:$4 sm:$0xff]   ;;  %v2735_v8 = vld [vmem:[%s2998_s7 + $0x34] ss:$8 sps:$4 sm:$0xff]  }
 0xc8b   :  { %v755_v25 = vrot.slane %v753_v24, 4  ;;  %v2744_v14 = vld [vmem:[%s2998_s7 + $0x30] ss:$8 sps:$4 sm:$0xff]  }
 0xc8c   :  { %v2001_v21 = vmul.f32 -1.442695, %v746_v11  ;;  %v2159_v11 = vld [vmem:[%s2996_s5 + $0x74] ss:$8 sps:$4 sm:$0xff]  }
 0xc8e   :  { %2225 = vpow2.f32 %v2001_v21  ;;  %v2157_v21 = vld [vmem:[%s2996_s5 + $0x70] ss:$8 sps:$4 sm:$0xff]  }
 0xc98   :  { %v2226_v43 = vpop.eup %2225 }
 0xc99   :  { %v750_v23 = vadd.f32 1.0, %v2226_v43 }
 0xc9b   :  { %2227 = vrcp.f32 %v750_v23 }
 0xca5   :  { %v2228_v26 = vpop.eup %2227 }
 0xca6   :  { %v757_v27 = vmul.f32 %v2228_v26, %v755_v25  ;;  %v760_v33 = vsub.f32 1.0, %v2228_v26  ;;  %v768_v36 = vmul.f32 %v2228_v26, %v766_v34 }
 0xca8   :  { %v758_v29 = vadd.f32 %v757_v27, %v2492_v30 }
 0xcaa   :  { %2229 = vtanh.f32 %v758_v29 }
 0xcb4   :  { %v2230_v32 = vpop.eup %2229 }
 0xcb5   :  { %762 = vrot.lane.b32.xlu0 %v2230_v32, %s2310_s25 }
 0xd27   :  { %v763_v35 = vpop.permute.xlu0 %762 }
 0xd28   :  { %v765_v37 = vmul.f32 %v763_v35, %v760_v33 }
 0xd2a   :  { %v2625_v38 = vadd.f32 %v768_v36, %v765_v37 }
 0xd2c   :  { %v776_v39 = vpack.c.bf16 %v2625_v38, %v2625_v38  ;;  %v848_v23 = vrot.slane %v2625_v38, 6 }
 0xd2e   :  { %v778_v41 = vrot.slane %v776_v39, 2 }
 0xd30   :  { %779 = vrot.lane.b32.xlu1 %v778_v41, %s2310_s25 }
 0xd34   :  { %279 = vrot.lane.b32.xlu1 %v2507_v51, %s2310_s25 }
 0xd38   :  { %446 = vrot.lane.b32.xlu1 %v2551_v50, %s2310_s25 }
 0xd3c   :  { %608 = vrot.lane.b32.xlu1 %v2594_v47, %s2310_s25 }
 0xd40   :  { %771 = vrot.lane.b32.xlu1 %v2625_v38, %s2310_s25 }
 0xda2   :  { %v780_v42 = vpop.permute.xlu1 %779 }
 0xda3   :  { %2002 = vmatmul.mubr.msk.bf16.vlgmr.msra.gmra.mrb[12].mxu0 %vm113_vm0, %v780_v42  ;;  %v877_v42 = vld [vmem:[%s2997_s6] sm:$0x3] }
 0xda4   :  { %1093 = vmatprep.mubr.bf16.mxu0 %v2309_v2 }
 0xda6   :  { %v280_v44 = vpop.permute.xlu1 %279 }
 0xda7   :  { %283 = vst.msk [vmem:[#allocation2] sm:$0x3] %vm282_vm5, %v280_v44  ;;  %v882_v44 = vrot.slane %v877_v42, %v2481_v20 }
 0xdaa   :  { %v447_v45 = vpop.permute.xlu1 %446 }
 0xdab   :  { %450 = vst.msk [vmem:[#allocation2] sm:$0x30] %vm449_vm6, %v447_v45 }
 0xdac   :  { %693 = vst.msk [vmem:[#allocation2 + $0x2] sm:$0xc] %vm367_vm2, %v2613_v1 }
 0xdae   :  { %v609_v51 = vpop.permute.xlu1 %608 }
 0xdaf   :  { %611 = vst.msk [vmem:[#allocation2 + $0x8] sm:$0x3] %vm282_vm5, %v609_v51 }
 0xdb2   :  { %v772_v50 = vpop.permute.xlu1 %771 }
 0xdb3   :  { %774 = vst.msk [vmem:[#allocation2 + $0x8] sm:$0x30] %vm449_vm6, %v772_v50 }
 0xe76   :  { %v818_v46 = vpop.f32.mrb[12].mxu0 }
 0xe77   :  { %v826_v48 = vrot.slane %v818_v46, 2  ;;  %v820_v49 = vpop.f32.mrb[13].mxu0  ;;  %v886_v46 = vrot.slane %v877_v42, %v2486_v22 }
 0xe78   :  { %v822_v52 = vpop.f32.mrb[14].mxu0  ;;  %v835_v57 = vadd.f32 %v2500_v40, %v820_v49  ;;  %v2130_v40 = vld [vmem:[%s2996_s5 + $0x14] ss:$8 sps:$4 sm:$0xff]  }
 0xe79   :  { %v828_v53 = vadd.f32 %v826_v48, %v2490_v28  ;;  %v823_v54 = vpop.f32.mrb[15].mxu0  ;;  %v2125_v28 = vld [vmem:[%s2996_s5] ss:$8 sps:$4 sm:$0xff]  }
 0xe7a   :  { %v837_v10 = vrot.slane %v835_v57, 2  ;;  %970 = vmatpush1.bf16.msra.mxu1 %v2125_v28  ;;  %v2798_v57 = vld [vmem:[%s2999_s8] ss:$0 sm:$0xff] }
 0xe7b   :  { %v2003_v55 = vmul.f32 -1.442695, %v828_v53  ;;  %971 = vmatprep.subr.bf16.mxu1 %v2130_v40 }
 0xe7d   :  { %2231 = vpow2.f32 %v2003_v55 }
 0xe7e   :  { %972 = vmatpush1.bf16.msra.mxu1 %v2128_v16 }
 0xe7f   :  { %973 = vmatprep.subr.bf16.mxu1 %v2133_v60 }
 0xe82   :  { %974 = vmatpush1.bf16.msra.mxu1 %v2131_v63 }
 0xe83   :  { %975 = vmatprep.subr.bf16.mxu1 %v2136_v0 }
 0xe87   :  { %v2232_v9 = vpop.eup %2231 }
 0xe88   :  { %v832_v56 = vadd.f32 1.0, %v2232_v9 }
 0xe8a   :  { %2233 = vrcp.f32 %v832_v56 }
 0xe94   :  { %v2644_v58 = vpop.eup %2233 }
 0xe95   :  { %v839_v12 = vmul.f32 %v2644_v58, %v837_v10  ;;  %v842_v43 = vsub.f32 1.0, %v2644_v58  ;;  %v850_v25 = vmul.f32 %v2644_v58, %v848_v23 }
 0xe97   :  { %v840_v13 = vadd.f32 %v839_v12, %v2492_v30  ;;  %v2661_v30 = vld [vmem:[%s2998_s7 + $0x4] ss:$8 sps:$4 sm:$0xff]  }
 0xe98   :  { %1061 = vmatprep.subr.bf16.mxu0 %v2661_v30 }
 0xe99   :  { %2235 = vtanh.f32 %v840_v13  ;;  %1062 = vmatpush1.bf16.msra.mxu0 %v2669_v17 }
 0xe9a   :  { %1063 = vmatprep.subr.bf16.mxu0 %v2678_v61 }
 0xe9d   :  { %1064 = vmatpush1.bf16.msra.mxu0 %v2686_v62 }
 0xea3   :  { %v2236_v15 = vpop.eup %2235 }
 0xea4   :  { %844 = vrot.lane.b32.xlu0 %v2236_v15, %s2310_s25 }
 0xea8   :  { %362 = vrot.lane.b32.xlu0 %v2529_v19, %s2310_s25  ;;  %v2134_v19 = vld [vmem:[%s2996_s5 + $0x30] ss:$8 sps:$4 sm:$0xff]  }
 0xea9   :  { %976 = vmatpush1.bf16.msra.mxu1 %v2134_v19 }
 0xeaa   :  { %977 = vmatprep.subr.bf16.mxu1 %v2141_v3 }
 0xeac   :  { %530 = vrot.lane.b32.xlu0 %v2573_v18, %s2310_s25  ;;  %v2139_v18 = vld [vmem:[%s2996_s5 + $0x40] ss:$8 sps:$4 sm:$0xff]  }
 0xead   :  { %978 = vmatpush1.bf16.msra.mxu1 %v2139_v18 }
 0xeae   :  { %979 = vmatprep.subr.bf16.mxu1 %v2147_v4 }
 0xeb0   :  { %689 = vrot.lane.b32.xlu0 %v2613_v1, %s2310_s25  ;;  %v2718_v1 = vld [vmem:[%s2998_s7 + $0x24] ss:$8 sps:$4 sm:$0xff]  }
 0xeb1   :  { %980 = vmatpush1.bf16.msra.mxu1 %v2145_v5  ;;  %1065 = vmatprep.subr.bf16.mxu0 %v2718_v1 }
 0xeb2   :  { %981 = vmatprep.subr.bf16.mxu1 %v2153_v6  ;;  %1066 = vmatpush1.bf16.msra.mxu0 %v2729_v31 }
 0xeb3   :  { %1067 = vmatprep.subr.bf16.mxu0 %v2735_v8 }
 0xeb5   :  { %982 = vmatpush1.bf16.msra.mxu1 %v2151_v7 }
 0xeb6   :  { %983 = vmatprep.subr.bf16.mxu1 %v2159_v11  ;;  %1068 = vmatpush1.bf16.msra.mxu0 %v2744_v14 }
 0xeb7   :  { %1134 = vmatprep.subr.bf16.mxu0 %v2661_v30 }
 0xeb9   :  { %984 = vmatpush1.bf16.msra.mxu1 %v2157_v21  ;;  %1094 = vmatmul.mubr.bf16.vlgmr.msra.gmra.mrb[16].mxu0 %v2309_v2 }
 0xeba   :  { %1211 = vmatprep.subr.bf16.mxu1 %v2661_v30  ;;  %1135 = vmatpush1.bf16.msra.mxu0 %v2669_v17 }
 0xebb   :  { %1166 = vmatprep.mubr.bf16.mxu0 %v2309_v2  ;;  %1136 = vmatprep.subr.bf16.mxu0 %v2678_v61 }
 0xebe   :  { %1137 = vmatpush1.bf16.msra.mxu0 %v2686_v62 }
 0xebf   :  { %1138 = vmatprep.subr.bf16.mxu0 %v2718_v1 }
 0xec2   :  { %1139 = vmatpush1.bf16.msra.mxu0 %v2729_v31 }
 0xec3   :  { %1140 = vmatprep.subr.bf16.mxu0 %v2735_v8 }
 0xec6   :  { %1141 = vmatpush1.bf16.msra.mxu0 %v2744_v14 }
 0xec7   :  { %1288 = vmatprep.subr.bf16.mxu0 %v2661_v30 }
 0xf16   :  { %v845_v24 = vpop.permute.xlu0 %844 }
 0xf17   :  { %v847_v26 = vmul.f32 %v845_v24, %v842_v43 }
 0xf19   :  { %v851_v27 = vadd.f32 %v850_v25, %v847_v26 }
 0xf1a   :  { %v363_v29 = vpop.permute.xlu0 %362 }
 0xf1b   :  { %857 = vst.msk [vmem:[#allocation2 - $0x6] sm:$0xc0] %vm535_vm4, %v851_v27  ;;  %853 = vrot.lane.b32.xlu0 %v851_v27, %s2310_s25 }
 0xf1c   :  { %366 = vst.msk [vmem:[#allocation2] sm:$0xc] %vm365_vm7, %v363_v29 }
 0xf1d   :  { %775 = vst.msk [vmem:[#allocation2 - $0x2] sm:$0x30] %vm451_vm3, %v2625_v38 }
 0xf1e   :  { %v531_v32 = vpop.permute.xlu0 %530 }
 0xf1f   :  { %534 = vst.msk [vmem:[#allocation2] sm:$0xc0] %vm533_vm8, %v531_v32 }
 0xf20   :  { %612 = vst.msk [vmem:[#allocation2 + $0x6] sm:$0x3] %vm284_vm1, %v2594_v47 }
 0xf22   :  { %v690_v33 = vpop.permute.xlu0 %689 }
 0xf23   :  { %692 = vst.msk [vmem:[#allocation2 + $0x8] sm:$0xc] %vm365_vm7, %v690_v33 }
 0xf27   :  { %v858_v35 = vld [vmem:[#allocation2] sm:$0xff] }
 0xf8c   :  { %v1095_v47 = vpop.f32.mrb[16].mxu0 }
 0xf8d   :  { %v854_v34 = vpop.permute.xlu0 %853  ;;  %v1097_v38 = vpop.f32.mrb[17].mxu0 }
 0xf8e   :  { %856 = vst.msk [vmem:[#allocation2 + $0x8] sm:$0xc0] %vm533_vm8, %v854_v34  ;;  %v1099_v39 = vpop.f32.mrb[18].mxu0  ;;  %v1115_v10 = vadd.f32 %v2798_v57, %v1097_v38 }
 0xf8f   :  { %v1100_v41 = vpop.f32.mrb[19].mxu0 }
 0xf95   :  { %v859_v36 = vld [vmem:[#allocation2 + $0x8] sm:$0xff] }
 0xf96   :  { %v860_v37 = vpack.c.bf16 %v859_v36, %v858_v35 }
 0xf98   :  { %1002 = vmatmul.mubr.bf16.vlgmr.msra.gmra.mrb[20].mxu1 %v860_v37 }
 0xf99   :  { %1212 = vmatpush1.bf16.msra.mxu1 %v2669_v17  ;;  %1243 = vmatprep.mubr.bf16.mxu1 %v2309_v2 }
 0xf9a   :  { %1213 = vmatprep.subr.bf16.mxu1 %v2678_v61 }
 0xf9d   :  { %1214 = vmatpush1.bf16.msra.mxu1 %v2686_v62 }
 0xf9e   :  { %1215 = vmatprep.subr.bf16.mxu1 %v2718_v1 }
 0xfa1   :  { %1216 = vmatpush1.bf16.msra.mxu1 %v2729_v31 }
 0xfa2   :  { %1217 = vmatprep.subr.bf16.mxu1 %v2735_v8 }
 0xfa5   :  { %1218 = vmatpush1.bf16.msra.mxu1 %v2744_v14 }
 0xfa6   :  { %1365 = vmatprep.subr.bf16.mxu1 %v2661_v30 }
0x106b   :  { %v1003_v45 = vpop.f32.mrb[20].mxu1 }
0x106c   :  { %v2787_v51 = vadd.f32 %v1003_v45, %v882_v44  ;;  %v1005_v50 = vpop.f32.mrb[21].mxu1 }
0x106d   :  { %v1007_v48 = vpop.f32.mrb[22].mxu1  ;;  %v2801_v13 = vadd.f32 %v1005_v50, %v886_v46 }
0x106e   :  { %v1102_v49 = vadd.f32 %v1095_v47, %v2787_v51  ;;  %v2791_v52 = vadd.f32 %v1007_v48, %v882_v44  ;;  %v1009_v53 = vpop.f32.mrb[23].mxu1 }
0x106f   :  { %v2793_v54 = vadd.f32 %v1009_v53, %v886_v46 }
0x1070   :  { %v2028_v55 = vmul.f32 -1.442695, %v1102_v49 }
0x1072   :  { %2237 = vpow2.f32 %v2028_v55 }
0x107c   :  { %v2238_v9 = vpop.eup %2237 }
0x107d   :  { %v1106_v56 = vadd.f32 1.0, %v2238_v9 }
0x107f   :  { %2239 = vrcp.f32 %v1106_v56 }
0x1089   :  { %v2240_v58 = vpop.eup %2239 }
0x108a   :  { %v1116_v12 = vmul.f32 %v2240_v58, %v1115_v10  ;;  %v1119_v59 = vsub.f32 1.0, %v2240_v58  ;;  %v1125_v16 = vmul.f32 0.0, %v2240_v58 }
0x108c   :  { %v1117_v15 = vadd.f32 %v1116_v12, %v2801_v13 }
0x108e   :  { %2241 = vtanh.f32 %v1117_v15 }
0x1098   :  { %v2242_v28 = vpop.eup %2241 }
0x1099   :  { %1121 = vrot.lane.b32.xlu1 %v2242_v28, %s2310_s25 }
0x110b   :  { %v1122_v40 = vpop.permute.xlu1 %1121 }
0x110c   :  { %v1124_v60 = vmul.f32 %v1122_v40, %v1119_v59 }
0x110e   :  { %v2805_v63 = vadd.f32 %v1125_v16, %v1124_v60 }
0x1110   :  { %v1127_v0 = vpack.c.bf16 %v2805_v63, %v2805_v63  ;;  %v1199_v25 = vrot.slane %v2805_v63, 6 }
0x1112   :  { %1129 = vrot.lane.b32.xlu0 %v1127_v0, %s2310_s25 }
0x1184   :  { %v1130_v19 = vpop.permute.xlu0 %1129 }
0x1185   :  { %2030 = vmatmul.mubr.msk.bf16.vlgmr.msra.gmra.mrb[20].mxu0 %vm113_vm0, %v1130_v19 }
0x1186   :  { %1289 = vmatpush1.bf16.msra.mxu0 %v2669_v17  ;;  %1320 = vmatprep.mubr.bf16.mxu0 %v2309_v2 }
0x1187   :  { %1290 = vmatprep.subr.bf16.mxu0 %v2678_v61 }
0x118a   :  { %1291 = vmatpush1.bf16.msra.mxu0 %v2686_v62 }
0x118b   :  { %1292 = vmatprep.subr.bf16.mxu0 %v2718_v1 }
0x118e   :  { %1293 = vmatpush1.bf16.msra.mxu0 %v2729_v31 }
0x118f   :  { %1294 = vmatprep.subr.bf16.mxu0 %v2735_v8 }
0x1192   :  { %1295 = vmatpush1.bf16.msra.mxu0 %v2744_v14 }
0x1193   :  { %1435 = vmatprep.subr.bf16.mxu0 %v2661_v30 }
0x1258   :  { %v1168_v3 = vpop.f32.mrb[20].mxu0 }
0x1259   :  { %v1176_v18 = vrot.slane %v1168_v3, 6  ;;  %v1170_v4 = vpop.f32.mrb[21].mxu0 }
0x125a   :  { %v1172_v5 = vpop.f32.mrb[22].mxu0  ;;  %v1185_v23 = vadd.f32 %v2798_v57, %v1170_v4 }
0x125b   :  { %v1178_v7 = vadd.f32 %v1176_v18, %v2787_v51  ;;  %v1173_v6 = vpop.f32.mrb[23].mxu0 }
0x125c   :  { %v1187_v24 = vrot.slane %v1185_v23, 6 }
0x125d   :  { %v2031_v11 = vmul.f32 -1.442695, %v1178_v7 }
0x125f   :  { %2243 = vpow2.f32 %v2031_v11 }
0x1269   :  { %v2244_v21 = vpop.eup %2243 }
0x126a   :  { %v1182_v43 = vadd.f32 1.0, %v2244_v21 }
0x126c   :  { %2245 = vrcp.f32 %v1182_v43 }
0x1276   :  { %v2246_v26 = vpop.eup %2245 }
0x1277   :  { %v1189_v27 = vmul.f32 %v2246_v26, %v1187_v24  ;;  %v1201_v29 = vmul.f32 %v2246_v26, %v1199_v25  ;;  %v1192_v34 = vsub.f32 1.0, %v2246_v26 }
0x1279   :  { %v1190_v32 = vadd.f32 %v1189_v27, %v2801_v13 }
0x127b   :  { %2247 = vtanh.f32 %v1190_v32 }
0x1285   :  { %v2248_v33 = vpop.eup %2247 }
0x1286   :  { %1194 = vrot.lane.b32.xlu1 %v2248_v33, %s2310_s25 }
0x12f8   :  { %v1195_v35 = vpop.permute.xlu1 %1194 }
0x12f9   :  { %v1197_v36 = vmul.f32 %v1195_v35, %v1192_v34 }
0x12fb   :  { %v1202_v37 = vadd.f32 %v1201_v29, %v1197_v36 }
0x12fd   :  { %v1203_v47 = vpack.c.bf16 %v1202_v37, %v1202_v37  ;;  %v1276_v9 = vrot.slane %v1202_v37, 6 }
0x12ff   :  { %v1205_v38 = vrot.slane %v1203_v47, 1 }
0x1301   :  { %1206 = vrot.lane.b32.xlu0 %v1205_v38, %s2310_s25 }
0x1373   :  { %v1207_v39 = vpop.permute.xlu0 %1206 }
0x1374   :  { %2032 = vmatmul.mubr.msk.bf16.vlgmr.msra.gmra.mrb[24].mxu1 %vm113_vm0, %v1207_v39 }
0x1375   :  { %1366 = vmatpush1.bf16.msra.mxu1 %v2669_v17  ;;  %1397 = vmatprep.mubr.bf16.mxu1 %v2309_v2 }
0x1376   :  { %1367 = vmatprep.subr.bf16.mxu1 %v2678_v61 }
0x1379   :  { %1368 = vmatpush1.bf16.msra.mxu1 %v2686_v62 }
0x137a   :  { %1369 = vmatprep.subr.bf16.mxu1 %v2718_v1 }
0x137d   :  { %1370 = vmatpush1.bf16.msra.mxu1 %v2729_v31 }
0x137e   :  { %1371 = vmatprep.subr.bf16.mxu1 %v2735_v8 }
0x1381   :  { %1372 = vmatpush1.bf16.msra.mxu1 %v2744_v14 }
0x1382   :  { %1512 = vmatprep.subr.bf16.mxu1 %v2661_v30 }
0x1447   :  { %v1245_v41 = vpop.f32.mrb[24].mxu1 }
0x1448   :  { %v1253_v42 = vrot.slane %v1245_v41, 4  ;;  %v1247_v44 = vpop.f32.mrb[25].mxu1 }
0x1449   :  { %v1249_v45 = vpop.f32.mrb[26].mxu1  ;;  %v1262_v55 = vadd.f32 %v2798_v57, %v1247_v44 }
0x144a   :  { %v1255_v50 = vadd.f32 %v1253_v42, %v2787_v51  ;;  %v1250_v46 = vpop.f32.mrb[27].mxu1 }
0x144b   :  { %v1264_v56 = vrot.slane %v1262_v55, 4 }
0x144c   :  { %v2033_v48 = vmul.f32 -1.442695, %v1255_v50 }
0x144e   :  { %2249 = vpow2.f32 %v2033_v48 }
0x1458   :  { %v2250_v49 = vpop.eup %2249 }
0x1459   :  { %v1259_v53 = vadd.f32 1.0, %v2250_v49 }
0x145b   :  { %2251 = vrcp.f32 %v1259_v53 }
0x1465   :  { %v2252_v10 = vpop.eup %2251 }
0x1466   :  { %v1266_v58 = vmul.f32 %v2252_v10, %v1264_v56  ;;  %v1278_v12 = vmul.f32 %v2252_v10, %v1276_v9  ;;  %v1269_v59 = vsub.f32 1.0, %v2252_v10 }
0x1468   :  { %v1267_v15 = vadd.f32 %v1266_v58, %v2801_v13 }
0x146a   :  { %2253 = vtanh.f32 %v1267_v15 }
0x1474   :  { %v2254_v28 = vpop.eup %2253 }
0x1475   :  { %1271 = vrot.lane.b32.xlu1 %v2254_v28, %s2310_s25 }
0x14e7   :  { %v1272_v40 = vpop.permute.xlu1 %1271 }
0x14e8   :  { %v1274_v16 = vmul.f32 %v1272_v40, %v1269_v59 }
0x14ea   :  { %v1279_v60 = vadd.f32 %v1278_v12, %v1274_v16 }
0x14ec   :  { %v1280_v0 = vpack.c.bf16 %v1279_v60, %v1279_v60  ;;  %v1353_v25 = vrot.slane %v1279_v60, 6 }
0x14ee   :  { %v1282_v19 = vrot.slane %v1280_v0, 2 }
0x14f0   :  { %1283 = vrot.lane.b32.xlu0 %v1282_v19, %s2310_s25 }
0x1562   :  { %v1284_v3 = vpop.permute.xlu0 %1283 }
0x1563   :  { %2034 = vmatmul.mubr.msk.bf16.vlgmr.msra.gmra.mrb[24].mxu0 %vm113_vm0, %v1284_v3 }
0x1564   :  { %1436 = vmatpush1.bf16.msra.mxu0 %v2669_v17  ;;  %1467 = vmatprep.mubr.bf16.mxu0 %v2309_v2 }
0x1565   :  { %1437 = vmatprep.subr.bf16.mxu0 %v2678_v61 }
0x1568   :  { %1438 = vmatpush1.bf16.msra.mxu0 %v2686_v62 }
0x1569   :  { %1439 = vmatprep.subr.bf16.mxu0 %v2718_v1 }
0x156c   :  { %1440 = vmatpush1.bf16.msra.mxu0 %v2729_v31 }
0x156d   :  { %1441 = vmatprep.subr.bf16.mxu0 %v2735_v8 }
0x1570   :  { %1442 = vmatpush1.bf16.msra.mxu0 %v2744_v14 }
0x1571   :  { %1589 = vmatprep.subr.bf16.mxu0 %v2661_v30 }
0x1636   :  { %v1322_v18 = vpop.f32.mrb[24].mxu0 }
0x1637   :  { %v1330_v4 = vrot.slane %v1322_v18, 2  ;;  %v1324_v5 = vpop.f32.mrb[25].mxu0 }
0x1638   :  { %v1326_v7 = vpop.f32.mrb[26].mxu0  ;;  %v1339_v24 = vadd.f32 %v2798_v57, %v1324_v5 }
0x1639   :  { %v1332_v6 = vadd.f32 %v1330_v4, %v2787_v51  ;;  %v1327_v11 = vpop.f32.mrb[27].mxu0 }
0x163a   :  { %v1341_v26 = vrot.slane %v1339_v24, 2 }
0x163b   :  { %v2035_v21 = vmul.f32 -1.442695, %v1332_v6 }
0x163d   :  { %2255 = vpow2.f32 %v2035_v21 }
0x1647   :  { %v2256_v43 = vpop.eup %2255 }
0x1648   :  { %v1336_v23 = vadd.f32 1.0, %v2256_v43 }
0x164a   :  { %2257 = vrcp.f32 %v1336_v23 }
0x1654   :  { %v2258_v27 = vpop.eup %2257 }
0x1655   :  { %v1343_v29 = vmul.f32 %v2258_v27, %v1341_v26  ;;  %v1355_v32 = vmul.f32 %v2258_v27, %v1353_v25  ;;  %v1346_v51 = vsub.f32 1.0, %v2258_v27 }
0x1657   :  { %v1344_v30 = vadd.f32 %v1343_v29, %v2801_v13 }
0x1659   :  { %2259 = vtanh.f32 %v1344_v30 }
0x1663   :  { %v2260_v33 = vpop.eup %2259 }
0x1664   :  { %1348 = vrot.lane.b32.xlu1 %v2260_v33, %s2310_s25 }
0x16d6   :  { %v1349_v34 = vpop.permute.xlu1 %1348 }
0x16d7   :  { %v1351_v35 = vmul.f32 %v1349_v34, %v1346_v51 }
0x16d9   :  { %v1356_v36 = vadd.f32 %v1355_v32, %v1351_v35 }
0x16db   :  { %v1357_v37 = vpack.c.bf16 %v1356_v36, %v1356_v36  ;;  %v1424_v48 = vrot.slane %v1356_v36, 6 }
0x16dd   :  { %v1359_v47 = vrot.slane %v1357_v37, 3 }
0x16df   :  { %1360 = vrot.lane.b32.xlu0 %v1359_v47, %s2310_s25 }
0x1751   :  { %v1361_v38 = vpop.permute.xlu0 %1360 }
0x1752   :  { %2036 = vmatmul.mubr.msk.bf16.vlgmr.msra.gmra.mrb[28].mxu1 %vm113_vm0, %v1361_v38 }
0x1753   :  { %1513 = vmatpush1.bf16.msra.mxu1 %v2669_v17  ;;  %1544 = vmatprep.mubr.bf16.mxu1 %v2309_v2 }
0x1754   :  { %1514 = vmatprep.subr.bf16.mxu1 %v2678_v61 }
0x1757   :  { %1515 = vmatpush1.bf16.msra.mxu1 %v2686_v62 }
0x1758   :  { %1516 = vmatprep.subr.bf16.mxu1 %v2718_v1 }
0x175b   :  { %1517 = vmatpush1.bf16.msra.mxu1 %v2729_v31 }
0x175c   :  { %1518 = vmatprep.subr.bf16.mxu1 %v2735_v8 }
0x175f   :  { %1519 = vmatpush1.bf16.msra.mxu1 %v2744_v14 }
0x1825   :  { %v1399_v13 = vpop.f32.mrb[28].mxu1 }
0x1826   :  { %v1406_v39 = vadd.f32 %v1399_v13, %v2791_v52  ;;  %v1401_v41 = vpop.f32.mrb[29].mxu1 }
0x1827   :  { %v1403_v42 = vpop.f32.mrb[30].mxu1  ;;  %v1413_v49 = vadd.f32 %v2798_v57, %v1401_v41 }
0x1828   :  { %v2037_v44 = vmul.f32 -1.442695, %v1406_v39  ;;  %v1404_v45 = vpop.f32.mrb[31].mxu1 }
0x182a   :  { %2261 = vpow2.f32 %v2037_v44 }
0x1834   :  { %v2262_v50 = vpop.eup %2261 }
0x1835   :  { %v1410_v46 = vadd.f32 1.0, %v2262_v50 }
0x1837   :  { %2263 = vrcp.f32 %v1410_v46 }
0x1841   :  { %v2264_v53 = vpop.eup %2263 }
0x1842   :  { %v1414_v55 = vmul.f32 %v2264_v53, %v1413_v49  ;;  %v1426_v9 = vmul.f32 %v2264_v53, %v1424_v48  ;;  %v1417_v58 = vsub.f32 1.0, %v2264_v53 }
0x1844   :  { %v1415_v56 = vadd.f32 %v1414_v55, %v2793_v54 }
0x1846   :  { %2265 = vtanh.f32 %v1415_v56 }
0x1850   :  { %v2266_v10 = vpop.eup %2265 }
0x1851   :  { %1419 = vrot.lane.b32.xlu1 %v2266_v10, %s2310_s25 }
0x18c3   :  { %v1420_v12 = vpop.permute.xlu1 %1419 }
0x18c4   :  { %v1422_v15 = vmul.f32 %v1420_v12, %v1417_v58 }
0x18c6   :  { %v1427_v28 = vadd.f32 %v1426_v9, %v1422_v15 }
0x18c8   :  { %v1428_v59 = vpack.c.bf16 %v1427_v28, %v1427_v28 }
0x18ca   :  { %1430 = vrot.lane.b32.xlu0 %v1428_v59, %s2310_s25 }
0x193c   :  { %v1431_v40 = vpop.permute.xlu0 %1430 }
0x193d   :  { %2038 = vmatmul.mubr.msk.bf16.vlgmr.msra.gmra.mrb[28].mxu0 %vm113_vm0, %v1431_v40 }
0x193e   :  { %1590 = vmatpush1.bf16.msra.mxu0 %v2669_v17  ;;  %1621 = vmatprep.mubr.bf16.mxu0 %v2309_v2 }
0x193f   :  { %1591 = vmatprep.subr.bf16.mxu0 %v2678_v61 }
0x1942   :  { %1592 = vmatpush1.bf16.msra.mxu0 %v2686_v62 }
0x1943   :  { %1593 = vmatprep.subr.bf16.mxu0 %v2718_v1  ;;  %v1500_v1 = vrot.slane %v1427_v28, 6 }
0x1946   :  { %1594 = vmatpush1.bf16.msra.mxu0 %v2729_v31 }
0x1947   :  { %1595 = vmatprep.subr.bf16.mxu0 %v2735_v8 }
0x194a   :  { %1596 = vmatpush1.bf16.msra.mxu0 %v2744_v14 }
0x1a10   :  { %v1469_v16 = vpop.f32.mrb[28].mxu0 }
0x1a11   :  { %v1477_v60 = vrot.slane %v1469_v16, 6  ;;  %v1471_v0 = vpop.f32.mrb[29].mxu0 }
0x1a12   :  { %v1473_v19 = vpop.f32.mrb[30].mxu0  ;;  %v1486_v62 = vadd.f32 %v2798_v57, %v1471_v0 }
0x1a13   :  { %v1479_v17 = vadd.f32 %v1477_v60, %v2791_v52  ;;  %v1474_v3 = vpop.f32.mrb[31].mxu0 }
0x1a14   :  { %v1488_v31 = vrot.slane %v1486_v62, 6  ;;  %v2167_v62 = vld [vmem:[%s3000_s9 + $0x20] ss:$8 sps:$4 sm:$0xff]  }
0x1a15   :  { %v2039_v18 = vmul.f32 -1.442695, %v1479_v17 }
0x1a17   :  { %2267 = vpow2.f32 %v2039_v18  ;;  %v2163_v18 = vld [vmem:[%s3000_s9 + $0x4] ss:$8 sps:$4 sm:$0xff]  }
0x1a18   :  { %1734 = vmatprep.subr.bf16.mxu1 %v2163_v18 }
0x1a21   :  { %v2268_v61 = vpop.eup %2267 }
0x1a22   :  { %v1483_v4 = vadd.f32 1.0, %v2268_v61  ;;  %v2164_v61 = vld [vmem:[%s3000_s9 + $0x10] ss:$8 sps:$4 sm:$0xff]  }
0x1a24   :  { %2269 = vrcp.f32 %v1483_v4 }
0x1a2e   :  { %v2270_v5 = vpop.eup %2269 }
0x1a2f   :  { %v1490_v8 = vmul.f32 %v2270_v5, %v1488_v31  ;;  %v1502_v7 = vmul.f32 %v2270_v5, %v1500_v1  ;;  %v1493_v11 = vsub.f32 1.0, %v2270_v5  ;;  %v2172_v1 = vld [vmem:[%s3000_s9 + $0x34] ss:$8 sps:$4 sm:$0xff]   ;;  %v2170_v31 = vld [vmem:[%s3000_s9 + $0x30] ss:$8 sps:$4 sm:$0xff]  }
0x1a31   :  { %v1491_v14 = vadd.f32 %v1490_v8, %v2793_v54 }
0x1a33   :  { %2271 = vtanh.f32 %v1491_v14  ;;  %v2173_v14 = vld [vmem:[%s3002_s11 + $0x40] sm:$0xff]  }
0x1a34   :  { %2070 = vmatprep.subr.bf16.mxu0 %v2173_v14 }
0x1a3d   :  { %v2272_v6 = vpop.eup %2271 }
0x1a3e   :  { %1495 = vrot.lane.b32.xlu1 %v2272_v6, %s2310_s25  ;;  %v2174_v6 = vld [vmem:[%s3002_s11] sm:$0xff]  }
0x1ab0   :  { %v1496_v21 = vpop.permute.xlu1 %1495 }
0x1ab1   :  { %v1498_v43 = vmul.f32 %v1496_v21, %v1493_v11  ;;  %v2175_v11 = vld [vmem:[%s3002_s11 + $0x48] sm:$0xff]  }
0x1ab3   :  { %v1503_v23 = vadd.f32 %v1502_v7, %v1498_v43  ;;  %v1662_v43 = vrot.slane %v2805_v63, 2  ;;  %v2179_v63 = vld [vmem:[%s3002_s11 + $0x58] sm:$0xff]  }
0x1ab5   :  { %v1504_v24 = vpack.c.bf16 %v1503_v23, %v1503_v23  ;;  %v1577_v47 = vrot.slane %v1503_v23, 6  ;;  %v2176_v23 = vld [vmem:[%s3002_s11 + $0x8] sm:$0xff]  }
0x1ab7   :  { %v1506_v25 = vrot.slane %v1504_v24, 1 }
0x1ab9   :  { %1507 = vrot.lane.b32.xlu0 %v1506_v25, %s2310_s25  ;;  %v2177_v25 = vld [vmem:[%s3002_s11 + $0x50] sm:$0xff]  }
0x1b2b   :  { %v1508_v26 = vpop.permute.xlu0 %1507 }
0x1b2c   :  { %2040 = vmatmul.mubr.msk.bf16.vlgmr.msra.gmra.mrb[32].mxu1 %vm113_vm0, %v1508_v26  ;;  %v2178_v26 = vld [vmem:[%s3002_s11 + $0x10] sm:$0xff]  }
0x1b2d   :  { %1766 = vmatprep.mubr.bf16.mxu1 %v2309_v2 }
0x1bff   :  { %v1546_v27 = vpop.f32.mrb[32].mxu1 }
0x1c00   :  { %v1554_v29 = vrot.slane %v1546_v27, 4  ;;  %v1548_v32 = vpop.f32.mrb[33].mxu1  ;;  %v2180_v27 = vld [vmem:[%s3002_s11 + $0x18] sm:$0xff]  }
0x1c01   :  { %v1550_v30 = vpop.f32.mrb[34].mxu1  ;;  %v1563_v37 = vadd.f32 %v2798_v57, %v1548_v32  ;;  %v2182_v32 = vld [vmem:[%s3002_s11 + $0x20] sm:$0xff]  }
0x1c02   :  { %v1556_v33 = vadd.f32 %v1554_v29, %v2791_v52  ;;  %v1551_v51 = vpop.f32.mrb[35].mxu1  ;;  %v2181_v29 = vld [vmem:[%s3002_s11 + $0x60] sm:$0xff]   ;;  %v2183_v30 = vld [vmem:[%s3002_s11 + $0x68] sm:$0xff]  }
0x1c03   :  { %v1565_v38 = vrot.slane %v1563_v37, 4 }
0x1c04   :  { %v2041_v34 = vmul.f32 -1.442695, %v1556_v33  ;;  %v2184_v33 = vld [vmem:[%s3002_s11 + $0x28] sm:$0xff]  }
0x1c06   :  { %2273 = vpow2.f32 %v2041_v34 }
0x1c10   :  { %v2274_v35 = vpop.eup %2273 }
0x1c11   :  { %v1560_v36 = vadd.f32 1.0, %v2274_v35 }
0x1c13   :  { %2275 = vrcp.f32 %v1560_v36 }
0x1c1d   :  { %v2276_v13 = vpop.eup %2275 }
0x1c1e   :  { %v1567_v39 = vmul.f32 %v2276_v13, %v1565_v38  ;;  %v1579_v41 = vmul.f32 %v2276_v13, %v1577_v47  ;;  %v1570_v44 = vsub.f32 1.0, %v2276_v13  ;;  %v2185_v38 = vld [vmem:[%s3002_s11 + $0x70] sm:$0xff]  }
0x1c1f   :  { %v2186_v13 = vld [vmem:[%s3002_s11 + $0x30] sm:$0xff]  }
0x1c20   :  { %v1568_v2 = vadd.f32 %v1567_v39, %v2793_v54  ;;  %v2187_v39 = vld [vmem:[%s3002_s11 + $0x78] sm:$0xff]  }
0x1c22   :  { %2277 = vtanh.f32 %v1568_v2  ;;  %v1677_v2 = vld [vmem:[%s3001_s10] sm:$0x3]  ;;  %s2311_s10 = smov [#allocation4]  }
0x1c23   :  { %s1962_s6 = sshll.u32 %s2311_s10, 4  ;;  %s1963_s6 = int_to_ptr.vmem [resolvable:$true] %s1962_s6 }
0x1c24   :  { %s2285_s14 = scalar_lea.vmem %s1963_s6, 32  ;;  %p2290_p1 = scmp.lt.s32.totalorder %s1963_s6, %s1963_s6 }
0x1c25   :  { %p2286_p0 = scmp.ne.s32.totalorder %s1963_s6, %s2285_s14  ;;  %p2291_p2 = scmp.lt.s32.totalorder %s2285_s14, %s2285_s14 }
0x1c27   :  { %p2292_p3 = por %p2291_p2, %p2290_p1 }
0x1c29   :  { %p2293_p4 = pnand %p2292_p3, %p2286_p0 }
0x1c2c   :  { %v2278_v42 = vpop.eup %2277 }
0x1c2d   :  { %1572 = vrot.lane.b32.xlu1 %v2278_v42, %s2310_s25  ;;  %v1682_v42 = vrot.slane %v1677_v2, %v2481_v20 }
0x1c9f   :  { %v1573_v45 = vpop.permute.xlu1 %1572 }
0x1ca0   :  { %v1575_v50 = vmul.f32 %v1573_v45, %v1570_v44  ;;  %v1686_v44 = vrot.slane %v1677_v2, %v2486_v22 }
0x1ca2   :  { %v1580_v46 = vadd.f32 %v1579_v41, %v1575_v50  ;;  %v2188_v41 = vld [vmem:[%s3002_s11 + $0x38] sm:$0xff]  }
0x1ca4   :  { %v1581_v48 = vpack.c.bf16 %v1580_v46, %v1580_v46  ;;  %v1654_v16 = vrot.slane %v1580_v46, 6 }
0x1ca6   :  { %v1583_v49 = vrot.slane %v1581_v48, 2 }
0x1ca8   :  { %1584 = vrot.lane.b32.xlu0 %v1583_v49, %s2310_s25 }
0x1d1a   :  { %v1585_v53 = vpop.permute.xlu0 %1584 }
0x1d1b   :  { %2042 = vmatmul.mubr.msk.bf16.vlgmr.msra.gmra.mrb[32].mxu0 %vm113_vm0, %v1585_v53 }
0x1d1c   :  { %2071 = vmatpush3.bf16.msra.mxu0 %v2174_v6 }
0x1d1d   :  { %2072 = vmatprep.subr.bf16.mxu0 %v2175_v11 }
0x1d20   :  { %2073 = vmatpush3.bf16.msra.mxu0 %v2176_v23 }
0x1d21   :  { %2074 = vmatprep.subr.bf16.mxu0 %v2177_v25 }
0x1d24   :  { %2075 = vmatpush3.bf16.msra.mxu0 %v2178_v26 }
0x1d25   :  { %2076 = vmatprep.subr.bf16.mxu0 %v2179_v63 }
0x1d28   :  { %2077 = vmatpush3.bf16.msra.mxu0 %v2180_v27 }
0x1d29   :  { %2078 = vmatprep.subr.bf16.mxu0 %v2181_v29 }
0x1d2c   :  { %2079 = vmatpush3.bf16.msra.mxu0 %v2182_v32 }
0x1d2d   :  { %2080 = vmatprep.subr.bf16.mxu0 %v2183_v30 }
0x1d30   :  { %2081 = vmatpush3.bf16.msra.mxu0 %v2184_v33 }
0x1d31   :  { %2082 = vmatprep.subr.bf16.mxu0 %v2185_v38 }
0x1d34   :  { %2083 = vmatpush3.bf16.msra.mxu0 %v2186_v13 }
0x1d35   :  { %2084 = vmatprep.subr.bf16.mxu0 %v2187_v39 }
0x1d38   :  { %2085 = vmatpush3.bf16.msra.mxu0 %v2188_v41 }
0x1dee   :  { %v1623_v55 = vpop.f32.mrb[32].mxu0 }
0x1def   :  { %v1631_v9 = vrot.slane %v1623_v55, 2  ;;  %v1625_v56 = vpop.f32.mrb[33].mxu0 }
0x1df0   :  { %v1627_v10 = vpop.f32.mrb[34].mxu0  ;;  %v1640_v40 = vadd.f32 %v2798_v57, %v1625_v56  ;;  %v2166_v57 = vld [vmem:[%s3000_s9 + $0x14] ss:$8 sps:$4 sm:$0xff]  }
0x1df1   :  { %v1633_v58 = vadd.f32 %v1631_v9, %v2791_v52  ;;  %v1628_v12 = vpop.f32.mrb[35].mxu0  ;;  %v2161_v52 = vld [vmem:[%s3000_s9] ss:$8 sps:$4 sm:$0xff]  }
0x1df2   :  { %v1642_v60 = vrot.slane %v1640_v40, 2  ;;  %1735 = vmatpush1.bf16.msra.mxu1 %v2161_v52  ;;  %v2053_v12 = vld [vmem:[%s3003_s12] ss:$0 sm:$0xff] }
0x1df3   :  { %v2043_v15 = vmul.f32 -1.442695, %v1633_v58  ;;  %1736 = vmatprep.subr.bf16.mxu1 %v2166_v57 }
0x1df5   :  { %2279 = vpow2.f32 %v2043_v15 }
0x1df6   :  { %1737 = vmatpush1.bf16.msra.mxu1 %v2164_v61 }
0x1dff   :  { %v2280_v28 = vpop.eup %2279 }
0x1e00   :  { %v1637_v59 = vadd.f32 1.0, %v2280_v28 }
0x1e02   :  { %2281 = vrcp.f32 %v1637_v59 }
0x1e0c   :  { %v2282_v0 = vpop.eup %2281 }
0x1e0d   :  { %v1644_v19 = vmul.f32 %v2282_v0, %v1642_v60  ;;  %v1656_v17 = vmul.f32 %v2282_v0, %v1654_v16  ;;  %v1647_v5 = vsub.f32 1.0, %v2282_v0 }
0x1e0f   :  { %v1645_v3 = vadd.f32 %v1644_v19, %v2793_v54  ;;  %v2169_v54 = vld [vmem:[%s3000_s9 + $0x24] ss:$8 sps:$4 sm:$0xff]  }
0x1e10   :  { %1738 = vmatprep.subr.bf16.mxu1 %v2169_v54 }
0x1e11   :  { %2283 = vtanh.f32 %v1645_v3  ;;  %1739 = vmatpush1.bf16.msra.mxu1 %v2167_v62 }
0x1e12   :  { %1740 = vmatprep.subr.bf16.mxu1 %v2172_v1 }
0x1e15   :  { %1741 = vmatpush1.bf16.msra.mxu1 %v2170_v31 }
0x1e1b   :  { %v2284_v4 = vpop.eup %2283 }
0x1e1c   :  { %1649 = vrot.lane.b32.xlu1 %v2284_v4, %s2310_s25 }
0x1e8e   :  { %v1650_v8 = vpop.permute.xlu1 %1649 }
0x1e8f   :  { %v1652_v7 = vmul.f32 %v1650_v8, %v1647_v5 }
0x1e91   :  { %v1657_v21 = vadd.f32 %v1656_v17, %v1652_v7 }
0x1e93   :  { %v2095_v24 = vpack.i.bf16 %v1662_v43, %v1657_v21 }
0x1e95   :  { %2096 = vrot.lane.b32.xlu0 %v2095_v24, %s2310_s25 }
0x1f07   :  { %v2097_v51 = vpop.permute.xlu0 %2096 }
0x1f08   :  { %v2099_v34 = vunpack.i.h.bf16 %v2097_v51  ;;  %v2098_v35 = vunpack.i.l.bf16 %v2097_v51 }
0x1f0a   :  { %v1667_v36 = vsel %vm1666_vm9, %v2098_v35, %v2099_v34 }
0x1f0b   :  { %v1668_v37 = vpack.c.bf16 %v1667_v36, %v1667_v36 }
0x1f0d   :  { %v1690_v47 = vrot.slane %v1668_v37, 3 }
0x1f0f   :  { %2052 = vmatmul.mubr.msk.bf16.vlgmr.msra.gmra.mrb[36].mxu1 %vm113_vm0, %v1690_v47 }
0x1fe2   :  { %v1768_v45 = vpop.f32.mrb[36].mxu1 }
0x1fe3   :  { %v1769_v50 = vadd.f32 %v1768_v45, %v1682_v42  ;;  %v1770_v46 = vpop.f32.mrb[37].mxu1 }
0x1fe4   :  { %v1771_v48 = vadd.f32 %v1770_v46, %v1686_v44  ;;  %v1772_v49 = vpop.f32.mrb[38].mxu1 }
0x1fe5   :  { %v1775_v53 = vmax.f32 %v1769_v50, 0.0  ;;  %v1773_v55 = vpop.f32.mrb[39].mxu1 }
0x1fe6   :  { %v1776_v9 = vmax.f32 %v1771_v48, 0.0 }
0x1fe7   :  { %v1777_v10 = vpack.c.bf16 %v1775_v53, %v1775_v53 }
0x1fe8   :  { %v1778_v56 = vpack.c.bf16 %v1776_v9, %v1776_v9 }
0x1fea   :  { %1946 = vmatprep.mubr.bf16.mxu0 %v1778_v56 }
0x1feb   :  { %1947 = vmatmul.mubr.bf16.vlgmr.msra.gmra.mrb[36].mxu0 %v1777_v10 }
0x20be   :  { %v2086_v58 = vpop.f32.mrb[36].mxu0 }
0x20bf   :  { %v2087_v20 = vpop.f32.mrb[37].mxu0 }
0x20c0   :  { %v2088_v22 = vadd.f32 %v2087_v20, %v2086_v58  ;;  %v2089_v15 = vpop.f32.mrb[38].mxu0 }
0x20c1   :  { %v2090_v28 = vpop.f32.mrb[39].mxu0 }
0x20c2   :  { %v1949_v59 = vadd.f32 %v2088_v22, %v2053_v12 }
0x20c4   :  { %1955 = vst.msk [vmem:[#allocation4] sm:$0x3] %vm1954_vm10, %v1949_v59 }
0x20c5   :  { %2296 = shalt.err (!%p2293_p4)
}
0x20c6   :  { %s2297_s12 = scalar_lea.hbm %s3004_s13, 32 }
0x20c7   :  { %p2298_p5 = scmp.ne.s32.totalorder %s3004_s13, %s2297_s12  ;;  %p2301_p6 = scmp.lt.u32.totalorder %s2297_s12, %s3004_s13 }
0x20c9   :  { %p2303_p7 = pnand %p2301_p6, %p2298_p5 }
0x20cb   :  { %2306 = shalt.err (!%p2303_p7)
}
0x20cc   :  { %1965 = dma.vmem_to_hbm [thread:$0]  %s1963_s6, 32, %s3004_s13, [#allocation5]  }
0x20cd   :  { %2307 = dma.done.wait [#allocation5], 32  }
0x20ce   :  { %2308 = vsyncadd [#allocation5], 4294967264 }
0x20cf   :  { %1969 = vsyncpa [#allocation5], 1 }

</bundles_post_ra>
